<compile_context>
chip_gen: v7x
topology: tpu7x:2x2x1
jax: 0.10.0
libtpu: 0.0.40
codegen_flags: <defaults>
</compile_context>

<pallas_src>
import functools
import math

import jax
import jax.numpy as jnp
from jax.experimental import pallas as pl
from jax.experimental.pallas import tpu as pltpu

_HIGH = jax.lax.Precision.HIGHEST


# --------------------------------------------------------------------------
# Fused MHA kernel: single invocation, whole problem in VMEM.
#   x_ref    : (B*S, D)
#   wqkv_ref : (D, 3*HD)   (scale pre-folded into the Q columns)
#   bqkv_ref : (1, 3*HD)
#   wo_ref   : (HD, D)
#   bo_ref   : (1, D)
#   o_ref    : (B*S, D)
# --------------------------------------------------------------------------
def mha_kernel(x_ref, wqkv_ref, bqkv_ref, wo_ref, bo_ref, o_ref, *,
               batch, seq_len, num_heads, head_dim):
    HD = num_heads * head_dim

    x = x_ref[...]                                               # (B*S, D)

    # Fused QKV projection: one MXU pass, lane-dense N = 3*HD.
    qkv = jnp.dot(x, wqkv_ref[...],
                  preferred_element_type=jnp.float32, precision=_HIGH)
    qkv = qkv + bqkv_ref[...]                                    # (B*S, 3*HD)

    q = qkv[:, 0 * HD:1 * HD]        # 1/sqrt(Dh) already folded into wq/bq
    k = qkv[:, 1 * HD:2 * HD]
    v = qkv[:, 2 * HD:3 * HD]

    # Per-(head, batch) attention on contiguous lane slices of the (B*S, HD)
    # slab: no (S, H, Dh) relayouts, no batched minor-dim contractions.
    head_ctx = []
    for h in range(num_heads):
        c0, c1 = h * head_dim, (h + 1) * head_dim
        qh, kh, vh = q[:, c0:c1], k[:, c0:c1], v[:, c0:c1]
        rows = []
        for b in range(batch):
            r0, r1 = b * seq_len, (b + 1) * seq_len
            # scores = q @ k^T via dot_general (contract last dims; no
            # materialized transpose of k).
            s = jax.lax.dot_general(
                qh[r0:r1], kh[r0:r1],
                dimension_numbers=(((1,), (1,)), ((), ())),
                preferred_element_type=jnp.float32, precision=_HIGH)   # (S, S)
            # Numerically-stable softmax with an EXACT divide (tiny tensor;
            # pure slack in this launch-bound kernel).
            m = jnp.max(s, axis=-1, keepdims=True)
            p = jnp.exp(s - m)
            p = p / jnp.sum(p, axis=-1, keepdims=True)
            rows.append(jnp.dot(p, vh[r0:r1],
                                preferred_element_type=jnp.float32,
                                precision=_HIGH))                      # (S, Dh)
        head_ctx.append(jnp.concatenate(rows, axis=0))                 # (B*S, Dh)
    ctx = jnp.concatenate(head_ctx, axis=1)                            # (B*S, HD)

    # Output projection fused in the same kernel; single lane-dense store.
    out = jnp.dot(ctx, wo_ref[...],
                  preferred_element_type=jnp.float32, precision=_HIGH)
    out = out + bo_ref[...]                                            # (B*S, D)
    o_ref[...] = out.astype(o_ref.dtype)


# --------------------------------------------------------------------------
# One-time parameter fusion (call at init time, NOT per forward).
# PyTorch Linear stores (out_features, in_features).
# --------------------------------------------------------------------------
def prepare_mha_params(params, num_heads, head_dim):
    D = params["wq"].shape[1]
    HD = num_heads * head_dim
    scale = 1.0 / math.sqrt(float(head_dim))
    w_qkv = jnp.concatenate(
        [params["wq"] * scale, params["wk"], params["wv"]], axis=0).T  # (D, 3*HD)
    b_qkv = jnp.concatenate(
        [params["bq"] * scale, params["bk"], params["bv"]]).reshape(1, 3 * HD)
    return {
        "w_qkv": w_qkv,
        "b_qkv": b_qkv,
        "w_o": params["wo"].T,                                         # (HD, D)
        "b_o": params["bo"].reshape(1, D),
    }


# --------------------------------------------------------------------------
# Forward wrapper: single grid-less pallas_call, everything in VMEM.
# --------------------------------------------------------------------------
@functools.partial(jax.jit, static_argnames=("num_heads", "head_dim"))
def multi_head_attention(x, fused, *, num_heads, head_dim):
    B, S, D = x.shape
    kern = functools.partial(mha_kernel, batch=B, seq_len=S,
                             num_heads=num_heads, head_dim=head_dim)
    vmem_spec = pl.BlockSpec(memory_space=pltpu.MemorySpace.VMEM)

    out2d = pl.pallas_call(
        kern,
        out_shape=jax.ShapeDtypeStruct((B * S, D), x.dtype),
        in_specs=[vmem_spec] * 5,
        out_specs=vmem_spec,
    )(x.reshape(B * S, D), fused["w_qkv"], fused["b_qkv"],
      fused["w_o"], fused["b_o"])

    return out2d.reshape(B, S, D)


# --------------------------------------------------------------------------
# Pure-JAX reference for correctness checking
# --------------------------------------------------------------------------
def reference(x, params, num_heads, head_dim):
    B, S, D = x.shape
    q = jnp.dot(x, params["wq"].T, precision=_HIGH) + params["bq"]
    k = jnp.dot(x, params["wk"].T, precision=_HIGH) + params["bk"]
    v = jnp.dot(x, params["wv"].T, precision=_HIGH) + params["bv"]
    q = q.reshape(B, S, num_heads, head_dim).transpose(0, 2, 1, 3)
    k = k.reshape(B, S, num_heads, head_dim).transpose(0, 2, 1, 3)
    v = v.reshape(B, S, num_heads, head_dim).transpose(0, 2, 1, 3)
    scores = jnp.einsum('bhqd,bhkd->bhqk', q, k,
                        precision=_HIGH) / jnp.sqrt(jnp.float32(head_dim))
    w = jax.nn.softmax(scores, axis=-1)
    o = jnp.einsum('bhqk,bhkd->bhqd', w, v, precision=_HIGH)
    o = o.transpose(0, 2, 1, 3).reshape(B, S, num_heads * head_dim)
    return jnp.dot(o, params["wo"].T, precision=_HIGH) + params["bo"]


# --------------------------------------------------------------------------
if __name__ == "__main__":
    B, S = 2, 8
    input_dim, num_heads, head_dim = 32, 4, 8
    HD = num_heads * head_dim

    key = jax.random.PRNGKey(0)
    ks = jax.random.split(key, 9)
    init = lambda k, shape, fan_in: (
        jax.random.uniform(k, shape, jnp.float32, -1.0, 1.0) / jnp.sqrt(fan_in))

    params = {
        "wq": init(ks[0], (HD, input_dim), input_dim),
        "bq": init(ks[1], (HD,), input_dim),
        "wk": init(ks[2], (HD, input_dim), input_dim),
        "bk": init(ks[3], (HD,), input_dim),
        "wv": init(ks[4], (HD, input_dim), input_dim),
        "bv": init(ks[5], (HD,), input_dim),
        "wo": init(ks[6], (input_dim, HD), HD),
        "bo": init(ks[7], (input_dim,), HD),
    }

    x = jax.random.normal(ks[8], (B, S, input_dim), jnp.float32)

    # Parameter fusion happens ONCE here (init time), not per forward call.
    fused = prepare_mha_params(params, num_heads, head_dim)
    fused = jax.tree_util.tree_map(jax.block_until_ready, fused)

    out = multi_head_attention(x, fused, num_heads=num_heads, head_dim=head_dim)
    out = jax.block_until_ready(out)

    ref = reference(x, params, num_heads, head_dim)
    assert out.shape == (B, S, input_dim)
    # Exact softmax divide + HIGHEST-precision matmuls on both sides -> tight
    # tolerance is restored.
    max_err = float(jnp.max(jnp.abs(out - ref)))
    assert jnp.allclose(out, ref, atol=1e-5, rtol=1e-5), max_err

    print("KERNEL_OK")
</pallas_src>

<mosaic_0001>
module attributes {stable_mosaic.version = 11 : i64} {
  func.func @mha_kernel(%arg0: memref<16x32xf32, #tpu.memory_space<vmem>>, %arg1: memref<32x96xf32, #tpu.memory_space<vmem>>, %arg2: memref<1x96xf32, #tpu.memory_space<vmem>>, %arg3: memref<32x32xf32, #tpu.memory_space<vmem>>, %arg4: memref<1x32xf32, #tpu.memory_space<vmem>>, %arg5: memref<16x32xf32, #tpu.memory_space<vmem>>) attributes {dimension_semantics = [], scalar_prefetch = 0 : i64, scratch_operands = 0 : i64, tpu.core_type = #tpu.core_type<tc>} {
    %c0 = arith.constant 0 : index
    %c0_0 = arith.constant 0 : index
    %0 = vector.load %arg0[%c0, %c0_0] : memref<16x32xf32, #tpu.memory_space<vmem>>, vector<16x32xf32>
    %c0_1 = arith.constant 0 : index
    %c0_2 = arith.constant 0 : index
    %1 = vector.load %arg1[%c0_1, %c0_2] : memref<32x96xf32, #tpu.memory_space<vmem>>, vector<32x96xf32>
    %cst = arith.constant dense<0.000000e+00> : vector<16x96xf32>
    %2 = tpu.matmul %0, %1, %cst {dimension_numbers = #tpu.dot_dimension_numbers<[1], [0], [0], [1], [0, 0, 1, 1], [], []>, precision = #tpu.contract_precision<fp32>} : vector<16x32xf32>, vector<32x96xf32>, vector<16x96xf32> -> vector<16x96xf32>
    %c0_3 = arith.constant 0 : index
    %c0_4 = arith.constant 0 : index
    %3 = vector.load %arg2[%c0_3, %c0_4] : memref<1x96xf32, #tpu.memory_space<vmem>>, vector<1x96xf32>
    %4 = vector.broadcast %3 : vector<1x96xf32> to vector<16x96xf32>
    %5 = arith.addf %2, %4 : vector<16x96xf32>
    %6 = vector.extract_strided_slice %5 {offsets = [0, 0], sizes = [16, 32], strides = [1, 1]} : vector<16x96xf32> to vector<16x32xf32>
    %7 = vector.extract_strided_slice %5 {offsets = [0, 32], sizes = [16, 32], strides = [1, 1]} : vector<16x96xf32> to vector<16x32xf32>
    %8 = vector.extract_strided_slice %5 {offsets = [0, 64], sizes = [16, 32], strides = [1, 1]} : vector<16x96xf32> to vector<16x32xf32>
    %9 = vector.extract_strided_slice %6 {offsets = [0, 0], sizes = [16, 8], strides = [1, 1]} : vector<16x32xf32> to vector<16x8xf32>
    %10 = vector.extract_strided_slice %7 {offsets = [0, 0], sizes = [16, 8], strides = [1, 1]} : vector<16x32xf32> to vector<16x8xf32>
    %11 = vector.extract_strided_slice %8 {offsets = [0, 0], sizes = [16, 8], strides = [1, 1]} : vector<16x32xf32> to vector<16x8xf32>
    %12 = vector.extract_strided_slice %9 {offsets = [0, 0], sizes = [8, 8], strides = [1, 1]} : vector<16x8xf32> to vector<8x8xf32>
    %13 = vector.extract_strided_slice %10 {offsets = [0, 0], sizes = [8, 8], strides = [1, 1]} : vector<16x8xf32> to vector<8x8xf32>
    %cst_5 = arith.constant dense<0.000000e+00> : vector<8x8xf32>
    %14 = tpu.matmul %12, %13, %cst_5 {dimension_numbers = #tpu.dot_dimension_numbers<[1], [1], [0], [0], [0, 0, 1, 0], [], []>, precision = #tpu.contract_precision<fp32>} : vector<8x8xf32>, vector<8x8xf32>, vector<8x8xf32> -> vector<8x8xf32>
    %cst_6 = arith.constant dense<0xFF800000> : vector<8xf32>
    %15 = vector.multi_reduction <maximumf>, %14, %cst_6 [1] : vector<8x8xf32> to vector<8xf32>
    %16 = vector.shape_cast %15 : vector<8xf32> to vector<8x1xf32>
    %17 = vector.broadcast %16 : vector<8x1xf32> to vector<8x8xf32>
    %18 = arith.subf %14, %17 : vector<8x8xf32>
    %19 = math.exp %18 : vector<8x8xf32>
    %cst_7 = arith.constant dense<0.000000e+00> : vector<8xf32>
    %20 = vector.multi_reduction <add>, %19, %cst_7 [1] : vector<8x8xf32> to vector<8xf32>
    %21 = vector.shape_cast %20 : vector<8xf32> to vector<8x1xf32>
    %22 = vector.broadcast %21 : vector<8x1xf32> to vector<8x8xf32>
    %23 = arith.divf %19, %22 : vector<8x8xf32>
    %24 = vector.extract_strided_slice %11 {offsets = [0, 0], sizes = [8, 8], strides = [1, 1]} : vector<16x8xf32> to vector<8x8xf32>
    %cst_8 = arith.constant dense<0.000000e+00> : vector<8x8xf32>
    %25 = tpu.matmul %23, %24, %cst_8 {dimension_numbers = #tpu.dot_dimension_numbers<[1], [0], [0], [1], [0, 0, 1, 1], [], []>, precision = #tpu.contract_precision<fp32>} : vector<8x8xf32>, vector<8x8xf32>, vector<8x8xf32> -> vector<8x8xf32>
    %26 = vector.extract_strided_slice %9 {offsets = [8, 0], sizes = [8, 8], strides = [1, 1]} : vector<16x8xf32> to vector<8x8xf32>
    %27 = vector.extract_strided_slice %10 {offsets = [8, 0], sizes = [8, 8], strides = [1, 1]} : vector<16x8xf32> to vector<8x8xf32>
    %cst_9 = arith.constant dense<0.000000e+00> : vector<8x8xf32>
    %28 = tpu.matmul %26, %27, %cst_9 {dimension_numbers = #tpu.dot_dimension_numbers<[1], [1], [0], [0], [0, 0, 1, 0], [], []>, precision = #tpu.contract_precision<fp32>} : vector<8x8xf32>, vector<8x8xf32>, vector<8x8xf32> -> vector<8x8xf32>
    %cst_10 = arith.constant dense<0xFF800000> : vector<8xf32>
    %29 = vector.multi_reduction <maximumf>, %28, %cst_10 [1] : vector<8x8xf32> to vector<8xf32>
    %30 = vector.shape_cast %29 : vector<8xf32> to vector<8x1xf32>
    %31 = vector.broadcast %30 : vector<8x1xf32> to vector<8x8xf32>
    %32 = arith.subf %28, %31 : vector<8x8xf32>
    %33 = math.exp %32 : vector<8x8xf32>
    %cst_11 = arith.constant dense<0.000000e+00> : vector<8xf32>
    %34 = vector.multi_reduction <add>, %33, %cst_11 [1] : vector<8x8xf32> to vector<8xf32>
    %35 = vector.shape_cast %34 : vector<8xf32> to vector<8x1xf32>
    %36 = vector.broadcast %35 : vector<8x1xf32> to vector<8x8xf32>
    %37 = arith.divf %33, %36 : vector<8x8xf32>
    %38 = vector.extract_strided_slice %11 {offsets = [8, 0], sizes = [8, 8], strides = [1, 1]} : vector<16x8xf32> to vector<8x8xf32>
    %cst_12 = arith.constant dense<0.000000e+00> : vector<8x8xf32>
    %39 = tpu.matmul %37, %38, %cst_12 {dimension_numbers = #tpu.dot_dimension_numbers<[1], [0], [0], [1], [0, 0, 1, 1], [], []>, precision = #tpu.contract_precision<fp32>} : vector<8x8xf32>, vector<8x8xf32>, vector<8x8xf32> -> vector<8x8xf32>
    %40 = tpu.concatenate %25, %39 in 0 : vector<8x8xf32>, vector<8x8xf32> -> vector<16x8xf32>
    %41 = vector.extract_strided_slice %6 {offsets = [0, 8], sizes = [16, 8], strides = [1, 1]} : vector<16x32xf32> to vector<16x8xf32>
    %42 = vector.extract_strided_slice %7 {offsets = [0, 8], sizes = [16, 8], strides = [1, 1]} : vector<16x32xf32> to vector<16x8xf32>
    %43 = vector.extract_strided_slice %8 {offsets = [0, 8], sizes = [16, 8], strides = [1, 1]} : vector<16x32xf32> to vector<16x8xf32>
    %44 = vector.extract_strided_slice %41 {offsets = [0, 0], sizes = [8, 8], strides = [1, 1]} : vector<16x8xf32> to vector<8x8xf32>
    %45 = vector.extract_strided_slice %42 {offsets = [0, 0], sizes = [8, 8], strides = [1, 1]} : vector<16x8xf32> to vector<8x8xf32>
    %cst_13 = arith.constant dense<0.000000e+00> : vector<8x8xf32>
    %46 = tpu.matmul %44, %45, %cst_13 {dimension_numbers = #tpu.dot_dimension_numbers<[1], [1], [0], [0], [0, 0, 1, 0], [], []>, precision = #tpu.contract_precision<fp32>} : vector<8x8xf32>, vector<8x8xf32>, vector<8x8xf32> -> vector<8x8xf32>
    %cst_14 = arith.constant dense<0xFF800000> : vector<8xf32>
    %47 = vector.multi_reduction <maximumf>, %46, %cst_14 [1] : vector<8x8xf32> to vector<8xf32>
    %48 = vector.shape_cast %47 : vector<8xf32> to vector<8x1xf32>
    %49 = vector.broadcast %48 : vector<8x1xf32> to vector<8x8xf32>
    %50 = arith.subf %46, %49 : vector<8x8xf32>
    %51 = math.exp %50 : vector<8x8xf32>
    %cst_15 = arith.constant dense<0.000000e+00> : vector<8xf32>
    %52 = vector.multi_reduction <add>, %51, %cst_15 [1] : vector<8x8xf32> to vector<8xf32>
    %53 = vector.shape_cast %52 : vector<8xf32> to vector<8x1xf32>
    %54 = vector.broadcast %53 : vector<8x1xf32> to vector<8x8xf32>
    %55 = arith.divf %51, %54 : vector<8x8xf32>
    %56 = vector.extract_strided_slice %43 {offsets = [0, 0], sizes = [8, 8], strides = [1, 1]} : vector<16x8xf32> to vector<8x8xf32>
    %cst_16 = arith.constant dense<0.000000e+00> : vector<8x8xf32>
    %57 = tpu.matmul %55, %56, %cst_16 {dimension_numbers = #tpu.dot_dimension_numbers<[1], [0], [0], [1], [0, 0, 1, 1], [], []>, precision = #tpu.contract_precision<fp32>} : vector<8x8xf32>, vector<8x8xf32>, vector<8x8xf32> -> vector<8x8xf32>
    %58 = vector.extract_strided_slice %41 {offsets = [8, 0], sizes = [8, 8], strides = [1, 1]} : vector<16x8xf32> to vector<8x8xf32>
    %59 = vector.extract_strided_slice %42 {offsets = [8, 0], sizes = [8, 8], strides = [1, 1]} : vector<16x8xf32> to vector<8x8xf32>
    %cst_17 = arith.constant dense<0.000000e+00> : vector<8x8xf32>
    %60 = tpu.matmul %58, %59, %cst_17 {dimension_numbers = #tpu.dot_dimension_numbers<[1], [1], [0], [0], [0, 0, 1, 0], [], []>, precision = #tpu.contract_precision<fp32>} : vector<8x8xf32>, vector<8x8xf32>, vector<8x8xf32> -> vector<8x8xf32>
    %cst_18 = arith.constant dense<0xFF800000> : vector<8xf32>
    %61 = vector.multi_reduction <maximumf>, %60, %cst_18 [1] : vector<8x8xf32> to vector<8xf32>
    %62 = vector.shape_cast %61 : vector<8xf32> to vector<8x1xf32>
    %63 = vector.broadcast %62 : vector<8x1xf32> to vector<8x8xf32>
    %64 = arith.subf %60, %63 : vector<8x8xf32>
    %65 = math.exp %64 : vector<8x8xf32>
    %cst_19 = arith.constant dense<0.000000e+00> : vector<8xf32>
    %66 = vector.multi_reduction <add>, %65, %cst_19 [1] : vector<8x8xf32> to vector<8xf32>
    %67 = vector.shape_cast %66 : vector<8xf32> to vector<8x1xf32>
    %68 = vector.broadcast %67 : vector<8x1xf32> to vector<8x8xf32>
    %69 = arith.divf %65, %68 : vector<8x8xf32>
    %70 = vector.extract_strided_slice %43 {offsets = [8, 0], sizes = [8, 8], strides = [1, 1]} : vector<16x8xf32> to vector<8x8xf32>
    %cst_20 = arith.constant dense<0.000000e+00> : vector<8x8xf32>
    %71 = tpu.matmul %69, %70, %cst_20 {dimension_numbers = #tpu.dot_dimension_numbers<[1], [0], [0], [1], [0, 0, 1, 1], [], []>, precision = #tpu.contract_precision<fp32>} : vector<8x8xf32>, vector<8x8xf32>, vector<8x8xf32> -> vector<8x8xf32>
    %72 = tpu.concatenate %57, %71 in 0 : vector<8x8xf32>, vector<8x8xf32> -> vector<16x8xf32>
    %73 = vector.extract_strided_slice %6 {offsets = [0, 16], sizes = [16, 8], strides = [1, 1]} : vector<16x32xf32> to vector<16x8xf32>
    %74 = vector.extract_strided_slice %7 {offsets = [0, 16], sizes = [16, 8], strides = [1, 1]} : vector<16x32xf32> to vector<16x8xf32>
    %75 = vector.extract_strided_slice %8 {offsets = [0, 16], sizes = [16, 8], strides = [1, 1]} : vector<16x32xf32> to vector<16x8xf32>
    %76 = vector.extract_strided_slice %73 {offsets = [0, 0], sizes = [8, 8], strides = [1, 1]} : vector<16x8xf32> to vector<8x8xf32>
    %77 = vector.extract_strided_slice %74 {offsets = [0, 0], sizes = [8, 8], strides = [1, 1]} : vector<16x8xf32> to vector<8x8xf32>
    %cst_21 = arith.constant dense<0.000000e+00> : vector<8x8xf32>
    %78 = tpu.matmul %76, %77, %cst_21 {dimension_numbers = #tpu.dot_dimension_numbers<[1], [1], [0], [0], [0, 0, 1, 0], [], []>, precision = #tpu.contract_precision<fp32>} : vector<8x8xf32>, vector<8x8xf32>, vector<8x8xf32> -> vector<8x8xf32>
    %cst_22 = arith.constant dense<0xFF800000> : vector<8xf32>
    %79 = vector.multi_reduction <maximumf>, %78, %cst_22 [1] : vector<8x8xf32> to vector<8xf32>
    %80 = vector.shape_cast %79 : vector<8xf32> to vector<8x1xf32>
    %81 = vector.broadcast %80 : vector<8x1xf32> to vector<8x8xf32>
    %82 = arith.subf %78, %81 : vector<8x8xf32>
    %83 = math.exp %82 : vector<8x8xf32>
    %cst_23 = arith.constant dense<0.000000e+00> : vector<8xf32>
    %84 = vector.multi_reduction <add>, %83, %cst_23 [1] : vector<8x8xf32> to vector<8xf32>
    %85 = vector.shape_cast %84 : vector<8xf32> to vector<8x1xf32>
    %86 = vector.broadcast %85 : vector<8x1xf32> to vector<8x8xf32>
    %87 = arith.divf %83, %86 : vector<8x8xf32>
    %88 = vector.extract_strided_slice %75 {offsets = [0, 0], sizes = [8, 8], strides = [1, 1]} : vector<16x8xf32> to vector<8x8xf32>
    %cst_24 = arith.constant dense<0.000000e+00> : vector<8x8xf32>
    %89 = tpu.matmul %87, %88, %cst_24 {dimension_numbers = #tpu.dot_dimension_numbers<[1], [0], [0], [1], [0, 0, 1, 1], [], []>, precision = #tpu.contract_precision<fp32>} : vector<8x8xf32>, vector<8x8xf32>, vector<8x8xf32> -> vector<8x8xf32>
    %90 = vector.extract_strided_slice %73 {offsets = [8, 0], sizes = [8, 8], strides = [1, 1]} : vector<16x8xf32> to vector<8x8xf32>
    %91 = vector.extract_strided_slice %74 {offsets = [8, 0], sizes = [8, 8], strides = [1, 1]} : vector<16x8xf32> to vector<8x8xf32>
    %cst_25 = arith.constant dense<0.000000e+00> : vector<8x8xf32>
    %92 = tpu.matmul %90, %91, %cst_25 {dimension_numbers = #tpu.dot_dimension_numbers<[1], [1], [0], [0], [0, 0, 1, 0], [], []>, precision = #tpu.contract_precision<fp32>} : vector<8x8xf32>, vector<8x8xf32>, vector<8x8xf32> -> vector<8x8xf32>
    %cst_26 = arith.constant dense<0xFF800000> : vector<8xf32>
    %93 = vector.multi_reduction <maximumf>, %92, %cst_26 [1] : vector<8x8xf32> to vector<8xf32>
    %94 = vector.shape_cast %93 : vector<8xf32> to vector<8x1xf32>
    %95 = vector.broadcast %94 : vector<8x1xf32> to vector<8x8xf32>
    %96 = arith.subf %92, %95 : vector<8x8xf32>
    %97 = math.exp %96 : vector<8x8xf32>
    %cst_27 = arith.constant dense<0.000000e+00> : vector<8xf32>
    %98 = vector.multi_reduction <add>, %97, %cst_27 [1] : vector<8x8xf32> to vector<8xf32>
    %99 = vector.shape_cast %98 : vector<8xf32> to vector<8x1xf32>
    %100 = vector.broadcast %99 : vector<8x1xf32> to vector<8x8xf32>
    %101 = arith.divf %97, %100 : vector<8x8xf32>
    %102 = vector.extract_strided_slice %75 {offsets = [8, 0], sizes = [8, 8], strides = [1, 1]} : vector<16x8xf32> to vector<8x8xf32>
    %cst_28 = arith.constant dense<0.000000e+00> : vector<8x8xf32>
    %103 = tpu.matmul %101, %102, %cst_28 {dimension_numbers = #tpu.dot_dimension_numbers<[1], [0], [0], [1], [0, 0, 1, 1], [], []>, precision = #tpu.contract_precision<fp32>} : vector<8x8xf32>, vector<8x8xf32>, vector<8x8xf32> -> vector<8x8xf32>
    %104 = tpu.concatenate %89, %103 in 0 : vector<8x8xf32>, vector<8x8xf32> -> vector<16x8xf32>
    %105 = vector.extract_strided_slice %6 {offsets = [0, 24], sizes = [16, 8], strides = [1, 1]} : vector<16x32xf32> to vector<16x8xf32>
    %106 = vector.extract_strided_slice %7 {offsets = [0, 24], sizes = [16, 8], strides = [1, 1]} : vector<16x32xf32> to vector<16x8xf32>
    %107 = vector.extract_strided_slice %8 {offsets = [0, 24], sizes = [16, 8], strides = [1, 1]} : vector<16x32xf32> to vector<16x8xf32>
    %108 = vector.extract_strided_slice %105 {offsets = [0, 0], sizes = [8, 8], strides = [1, 1]} : vector<16x8xf32> to vector<8x8xf32>
    %109 = vector.extract_strided_slice %106 {offsets = [0, 0], sizes = [8, 8], strides = [1, 1]} : vector<16x8xf32> to vector<8x8xf32>
    %cst_29 = arith.constant dense<0.000000e+00> : vector<8x8xf32>
    %110 = tpu.matmul %108, %109, %cst_29 {dimension_numbers = #tpu.dot_dimension_numbers<[1], [1], [0], [0], [0, 0, 1, 0], [], []>, precision = #tpu.contract_precision<fp32>} : vector<8x8xf32>, vector<8x8xf32>, vector<8x8xf32> -> vector<8x8xf32>
    %cst_30 = arith.constant dense<0xFF800000> : vector<8xf32>
    %111 = vector.multi_reduction <maximumf>, %110, %cst_30 [1] : vector<8x8xf32> to vector<8xf32>
    %112 = vector.shape_cast %111 : vector<8xf32> to vector<8x1xf32>
    %113 = vector.broadcast %112 : vector<8x1xf32> to vector<8x8xf32>
    %114 = arith.subf %110, %113 : vector<8x8xf32>
    %115 = math.exp %114 : vector<8x8xf32>
    %cst_31 = arith.constant dense<0.000000e+00> : vector<8xf32>
    %116 = vector.multi_reduction <add>, %115, %cst_31 [1] : vector<8x8xf32> to vector<8xf32>
    %117 = vector.shape_cast %116 : vector<8xf32> to vector<8x1xf32>
    %118 = vector.broadcast %117 : vector<8x1xf32> to vector<8x8xf32>
    %119 = arith.divf %115, %118 : vector<8x8xf32>
    %120 = vector.extract_strided_slice %107 {offsets = [0, 0], sizes = [8, 8], strides = [1, 1]} : vector<16x8xf32> to vector<8x8xf32>
    %cst_32 = arith.constant dense<0.000000e+00> : vector<8x8xf32>
    %121 = tpu.matmul %119, %120, %cst_32 {dimension_numbers = #tpu.dot_dimension_numbers<[1], [0], [0], [1], [0, 0, 1, 1], [], []>, precision = #tpu.contract_precision<fp32>} : vector<8x8xf32>, vector<8x8xf32>, vector<8x8xf32> -> vector<8x8xf32>
    %122 = vector.extract_strided_slice %105 {offsets = [8, 0], sizes = [8, 8], strides = [1, 1]} : vector<16x8xf32> to vector<8x8xf32>
    %123 = vector.extract_strided_slice %106 {offsets = [8, 0], sizes = [8, 8], strides = [1, 1]} : vector<16x8xf32> to vector<8x8xf32>
    %cst_33 = arith.constant dense<0.000000e+00> : vector<8x8xf32>
    %124 = tpu.matmul %122, %123, %cst_33 {dimension_numbers = #tpu.dot_dimension_numbers<[1], [1], [0], [0], [0, 0, 1, 0], [], []>, precision = #tpu.contract_precision<fp32>} : vector<8x8xf32>, vector<8x8xf32>, vector<8x8xf32> -> vector<8x8xf32>
    %cst_34 = arith.constant dense<0xFF800000> : vector<8xf32>
    %125 = vector.multi_reduction <maximumf>, %124, %cst_34 [1] : vector<8x8xf32> to vector<8xf32>
    %126 = vector.shape_cast %125 : vector<8xf32> to vector<8x1xf32>
    %127 = vector.broadcast %126 : vector<8x1xf32> to vector<8x8xf32>
    %128 = arith.subf %124, %127 : vector<8x8xf32>
    %129 = math.exp %128 : vector<8x8xf32>
    %cst_35 = arith.constant dense<0.000000e+00> : vector<8xf32>
    %130 = vector.multi_reduction <add>, %129, %cst_35 [1] : vector<8x8xf32> to vector<8xf32>
    %131 = vector.shape_cast %130 : vector<8xf32> to vector<8x1xf32>
    %132 = vector.broadcast %131 : vector<8x1xf32> to vector<8x8xf32>
    %133 = arith.divf %129, %132 : vector<8x8xf32>
    %134 = vector.extract_strided_slice %107 {offsets = [8, 0], sizes = [8, 8], strides = [1, 1]} : vector<16x8xf32> to vector<8x8xf32>
    %cst_36 = arith.constant dense<0.000000e+00> : vector<8x8xf32>
    %135 = tpu.matmul %133, %134, %cst_36 {dimension_numbers = #tpu.dot_dimension_numbers<[1], [0], [0], [1], [0, 0, 1, 1], [], []>, precision = #tpu.contract_precision<fp32>} : vector<8x8xf32>, vector<8x8xf32>, vector<8x8xf32> -> vector<8x8xf32>
    %136 = tpu.concatenate %121, %135 in 0 : vector<8x8xf32>, vector<8x8xf32> -> vector<16x8xf32>
    %137 = tpu.concatenate %40, %72, %104, %136 in 1 : vector<16x8xf32>, vector<16x8xf32>, vector<16x8xf32>, vector<16x8xf32> -> vector<16x32xf32>
    %c0_37 = arith.constant 0 : index
    %c0_38 = arith.constant 0 : index
    %138 = vector.load %arg3[%c0_37, %c0_38] : memref<32x32xf32, #tpu.memory_space<vmem>>, vector<32x32xf32>
    %cst_39 = arith.constant dense<0.000000e+00> : vector<16x32xf32>
    %139 = tpu.matmul %137, %138, %cst_39 {dimension_numbers = #tpu.dot_dimension_numbers<[1], [0], [0], [1], [0, 0, 1, 1], [], []>, precision = #tpu.contract_precision<fp32>} : vector<16x32xf32>, vector<32x32xf32>, vector<16x32xf32> -> vector<16x32xf32>
    %c0_40 = arith.constant 0 : index
    %c0_41 = arith.constant 0 : index
    %140 = vector.load %arg4[%c0_40, %c0_41] : memref<1x32xf32, #tpu.memory_space<vmem>>, vector<1x32xf32>
    %141 = vector.broadcast %140 : vector<1x32xf32> to vector<16x32xf32>
    %142 = arith.addf %139, %141 : vector<16x32xf32>
    %c0_42 = arith.constant 0 : index
    %c0_43 = arith.constant 0 : index
    %143 = vector.load %arg5[%c0_42, %c0_43] : memref<16x32xf32, #tpu.memory_space<vmem>>, vector<16x32xf32>
    tpu.vector_store %arg5[%c0_42, %c0_43], %142 {strides = array<i32>} : memref<16x32xf32, #tpu.memory_space<vmem>>, vector<16x32xf32>,
    return
  }
}

</mosaic_0001>

<bundles_post_ra>
// kernel: multi_head_attention.1
= control target key start
LH: loop header
LB: loop body
LE: loop exit
PB: predicated region body
PF: predicated region fallthrough
CT: control target
= control target key end

     0   :  { %10 = vsyncpa [#allocation3], 0  ;;  %s10443_s0 = inlined_call_operand.hbm [shape: f32[16,32], index: 0, kind: input, shape index: {}]   ;;  %s10444_s1 = inlined_call_operand.hbm [shape: f32[32,96], index: 1, kind: input, shape index: {}]   ;;  %s10445_s2 = inlined_call_operand.vmem [shape: f32[1,96], index: 2, kind: input, shape index: {}]   ;;  %s10446_s3 = inlined_call_operand.hbm [shape: f32[32,32], index: 3, kind: input, shape index: {}]   ;;  %s10447_s4 = inlined_call_operand.vmem [shape: f32[1,32], index: 4, kind: input, shape index: {}]   ;;  %s10448_s5 = inlined_call_operand.hbm [shape: f32[16,32], index: 5, kind: output, shape index: {}]  }
   0x1   :  { %11 = vsyncpa [#allocation6], 0 }
   0x2   :  { %12 = vsyncpa [#allocation4], 0  ;;  %s9847_s18 = smov [#allocation5]   ;;  %s9848_s20 = smov [#allocation2]  }
   0x3   :  { %s30_s19 = sshll.u32 %s9847_s18, 4  ;;  %s18_s21 = sshll.u32 %s9848_s20, 4  ;;  %s31_s19 = int_to_ptr.vmem [resolvable:$true] %s30_s19  ;;  %s9898_s21 = int_to_ptr.vmem [resolvable:$true] %s18_s21 }
   0x4   :  { %s9753_s24 = scalar_lea.hbm %s10444_s1, 512 }
   0x5   :  { %p9754_p0 = scmp.ne.s32.totalorder %s10444_s1, %s9753_s24  ;;  %p9757_p1 = scmp.lt.u32.totalorder %s9753_s24, %s10444_s1 }
   0x7   :  { %p9759_p2 = pnand %p9757_p1, %p9754_p0 }
   0x9   :  { %9762 = shalt.err (!%p9759_p2)
}
   0xa   :  { %s9763_s29 = scalar_lea.vmem %s31_s19, 512  ;;  %p9768_p4 = scmp.lt.s32.totalorder %s31_s19, %s31_s19 }
   0xb   :  { %p9764_p3 = scmp.ne.s32.totalorder %s31_s19, %s9763_s29  ;;  %p9769_p5 = scmp.lt.s32.totalorder %s9763_s29, %s9763_s29 }
   0xd   :  { %p9770_p6 = por %p9769_p5, %p9768_p4 }
   0xf   :  { %p9771_p7 = pnand %p9770_p6, %p9764_p3 }
  0x11   :  { %9774 = shalt.err (!%p9771_p7)
}
  0x12   :  { %s9849_s30 = smov 128   ;;  %s9850_s6 = smov 8  }
  0x13   :  { %36 = dma.hbm_to_vmem [thread:$0]  %s10444_s1, 512, %s31_s19, [#allocation6], %s9849_s30, %s9849_s30, %s9850_s6  }
  0x14   :  { %s9775_s11 = scalar_lea.hbm %s10443_s0, 256 }
  0x15   :  { %p9776_p8 = scmp.ne.s32.totalorder %s10443_s0, %s9775_s11  ;;  %p9779_p9 = scmp.lt.u32.totalorder %s9775_s11, %s10443_s0 }
  0x17   :  { %p9781_p10 = pnand %p9779_p9, %p9776_p8 }
  0x19   :  { %9784 = shalt.err (!%p9781_p10)
}
  0x1a   :  { %s9785_s16 = scalar_lea.vmem %s9898_s21, 256  ;;  %p9790_p12 = scmp.lt.s32.totalorder %s9898_s21, %s9898_s21 }
  0x1b   :  { %p9786_p11 = scmp.ne.s32.totalorder %s9898_s21, %s9785_s16  ;;  %p9791_p13 = scmp.lt.s32.totalorder %s9785_s16, %s9785_s16 }
  0x1d   :  { %p9792_p0 = por %p9791_p13, %p9790_p12 }
  0x1f   :  { %p9793_p1 = pnand %p9792_p0, %p9786_p11 }
  0x21   :  { %9796 = shalt.err (!%p9793_p1)
}
  0x22   :  { %24 = dma.hbm_to_vmem [thread:$0]  %s10443_s0, 256, %s9898_s21, [#allocation3], %s9849_s30, %s9849_s30, %s9850_s6  }
  0x23   :  { %s9851_s18 = smov [#allocation7]   ;;  %s9797_s23 = scalar_lea.hbm %s10446_s3, 512 }
  0x24   :  { %s44_s19 = sshll.u32 %s9851_s18, 4  ;;  %p9798_p2 = scmp.ne.s32.totalorder %s10446_s3, %s9797_s23  ;;  %s45_s19 = int_to_ptr.vmem [resolvable:$true] %s44_s19 }
  0x25   :  { %p9801_p3 = scmp.lt.u32.totalorder %s9797_s23, %s10446_s3 }
  0x27   :  { %p9803_p4 = pnand %p9801_p3, %p9798_p2 }
  0x29   :  { %9806 = shalt.err (!%p9803_p4)
}
  0x2a   :  { %s9807_s28 = scalar_lea.vmem %s45_s19, 512  ;;  %p9812_p6 = scmp.lt.s32.totalorder %s45_s19, %s45_s19 }
  0x2b   :  { %p9808_p5 = scmp.ne.s32.totalorder %s45_s19, %s9807_s28  ;;  %p9813_p7 = scmp.lt.s32.totalorder %s9807_s28, %s9807_s28 }
  0x2d   :  { %p9814_p8 = por %p9813_p7, %p9812_p6 }
  0x2f   :  { %p9815_p9 = pnand %p9814_p8, %p9808_p5 }
  0x31   :  { %9818 = shalt.err (!%p9815_p9)
}
  0x32   :  { %50 = dma.hbm_to_vmem [thread:$0]  %s10446_s3, 512, %s45_s19, [#allocation6], %s9849_s30, %s9849_s30, %s9850_s6  }
  0x33   :  { %9841 = dma.done.wait [#allocation3], 256  }
  0x34   :  { %9842 = vsyncadd [#allocation3], 4294967040 }
  0x35   :  { %9843 = dma.done.wait [#allocation6], 1024  }
  0x36   :  { %9844 = vsyncadd [#allocation6], 4294966272  ;;  %vm75_vm0 = vcmask 261120   ;;  %v64_v0 = vld [vmem:[#allocation5] sm:$0xff]  ;;  %v65_v1 = vld [vmem:[#allocation5 + $0x8] sm:$0xff]  ;;  %v9852_v46 = vmov 0.0  }
  0x37   :  { %v66_v2 = vld [vmem:[#allocation5 + $0x10] sm:$0xff]  ;;  %v83_v3 = vand.u32 4294901760, %v64_v0  ;;  %v86_v4 = vand.u32 4294901760, %v65_v1  ;;  %v67_v5 = vld [vmem:[#allocation5 + $0x18] sm:$0xff]  ;;  %vm9853_vm1 = vmmov 0   ;;  %s9854_s7 = smov 120  }
  0x38   :  { %v89_v6 = vand.u32 4294901760, %v66_v2  ;;  %v62_v7 = vld [vmem:[#allocation2] sm:$0xff]  ;;  %v63_v8 = vld [vmem:[#allocation2 + $0x8] sm:$0xff]  ;;  %v92_v9 = vand.u32 4294901760, %v67_v5  ;;  %s9856_s8 = smov 88   ;;  %s9857_s9 = smov 80  }
  0x39   :  { %v77_v10 = vsel %vm75_vm0, %v62_v7, 0  ;;  %v80_v11 = vsel %vm75_vm0, %v63_v8, 0  ;;  %v9420_v12 = vpack.c.bf16 %v86_v4, %v83_v3  ;;  %v173_v15 = vsub.f32 %v64_v0, %v83_v3  ;;  %v8542_v47 = vld [vmem:[%s10445_s2] ss:$0 sm:$0xff]  ;;  %s9855_s2 = smov 96   ;;  %s9858_s10 = smov 112  }
  0x3a   :  { %v9952_v13 = vand.u32 4294901760, %v77_v10  ;;  %v9954_v14 = vand.u32 4294901760, %v80_v11  ;;  %v9424_v16 = vpack.c.bf16 %v92_v9, %v89_v6  ;;  %v180_v17 = vsub.f32 %v65_v1, %v86_v4  ;;  %s9859_s11 = smov 72   ;;  %s9860_s12 = smov 104  }
  0x3b   :  { %v187_v18 = vsub.f32 %v66_v2, %v89_v6  ;;  %v194_v19 = vsub.f32 %v67_v5, %v92_v9  ;;  %9421 = vmatprep.subr.bf16.mxu1 %v9420_v12  ;;  %9445 = vmatprep.subr.bf16.mxu0 %v9420_v12  ;;  %v174_v22 = vand.u32 4294901760, %v173_v15  ;;  %vm613_vm2 = vcmask 64512   ;;  %s9861_s13 = smov 64   ;;  %s9862_s14 = smov 56  }
  0x3c   :  { %v152_v20 = vsub.f32 %v77_v10, %v9952_v13  ;;  %v162_v21 = vsub.f32 %v80_v11, %v9954_v14  ;;  %9423 = vmatpush3.bf16.msra.mxu1 %v9420_v12  ;;  %9447 = vmatpush3.bf16.msra.mxu0 %v9420_v12  ;;  %v181_v23 = vand.u32 4294901760, %v180_v17  ;;  %v9436_v44 = vpack.c.bf16 %v180_v17, %v173_v15  ;;  %s9863_s15 = smov 48   ;;  %s9864_s16 = smov 40  }
  0x3d   :  { %v188_v24 = vand.u32 4294901760, %v187_v18  ;;  %v195_v25 = vand.u32 4294901760, %v194_v19  ;;  %9425 = vmatprep.subr.bf16.mxu1 %v9424_v16  ;;  %9449 = vmatprep.subr.bf16.mxu0 %v9424_v16  ;;  %v175_v28 = vsub.f32 %v173_v15, %v174_v22  ;;  %v9440_v45 = vpack.c.bf16 %v194_v19, %v187_v18  ;;  %s9865_s1 = smov 16   ;;  %s9866_s17 = smov 24  }
  0x3e   :  { %v153_v26 = vand.u32 4294901760, %v152_v20  ;;  %v163_v27 = vand.u32 4294901760, %v162_v21  ;;  %v182_v29 = vsub.f32 %v180_v17, %v181_v23  ;;  %v9452_v30 = vpack.c.bf16 %v181_v23, %v174_v22  ;;  %s9867_s20 = smov [#allocation8]  }
  0x3f   :  { %v189_v31 = vsub.f32 %v187_v18, %v188_v24  ;;  %v196_v32 = vsub.f32 %v194_v19, %v195_v25  ;;  %v176_v35 = vand.u32 4294901760, %v175_v28  ;;  %v9456_v43 = vpack.c.bf16 %v195_v25, %v188_v24  ;;  %s8529_s22 = sshll.u32 %s9867_s20, 4  ;;  %s8530_s22 = int_to_ptr.vmem [resolvable:$true] %s8529_s22 }
  0x40   :  { %v154_v33 = vsub.f32 %v152_v20, %v153_v26  ;;  %8849 = vmatprep.mubr.f32.mxu0 %v153_v26  ;;  %v164_v34 = vsub.f32 %v162_v21, %v163_v27  ;;  %9427 = vmatpush3.bf16.msra.mxu1 %v9424_v16  ;;  %v183_v36 = vand.u32 4294901760, %v182_v29  ;;  %vm7971_vm3 = vcmask 130048   ;;  %s9819_s23 = scalar_lea.vmem %s8530_s22, 256  ;;  %p9824_p11 = scmp.lt.s32.totalorder %s8530_s22, %s8530_s22 }
  0x41   :  { %9451 = vmatpush3.bf16.msra.mxu0 %v9424_v16  ;;  %v190_v37 = vand.u32 4294901760, %v189_v31  ;;  %v197_v38 = vand.u32 4294901760, %v196_v32  ;;  %vm7974_vm4 = vcmask 195584   ;;  %p9820_p10 = scmp.ne.s32.totalorder %s8530_s22, %s9819_s23  ;;  %p9825_p12 = scmp.lt.s32.totalorder %s9819_s23, %s9819_s23 }
  0x42   :  { %v155_v39 = vand.u32 4294901760, %v154_v33  ;;  %v165_v40 = vand.u32 4294901760, %v164_v34  ;;  %9453 = vmatprep.subr.bf16.mxu0 %v9452_v30  ;;  %v9428_v41 = vpack.c.bf16 %v183_v36, %v176_v35 }
  0x43   :  { %v9432_v42 = vpack.c.bf16 %v197_v38, %v190_v37  ;;  %p9826_p13 = por %p9825_p12, %p9824_p11 }
  0x44   :  { %8816 = vmatprep.mubr.f32.mxu1 %v155_v39  ;;  %8850 = vmatmul.mubr.f32.vlgmr.msra.gmra.mrb[0].mxu0 %v163_v27 }
  0x45   :  { %8817 = vmatmul.mubr.f32.vlgmr.msra.gmra.mrb[0].mxu1 %v165_v40  ;;  %9429 = vmatprep.subr.bf16.mxu1 %v9428_v41  ;;  %p9827_p0 = pnand %p9826_p13, %p9820_p10 }
  0x46   :  { %9431 = vmatpush3.bf16.msra.mxu1 %v9428_v41  ;;  %9455 = vmatpush3.bf16.msra.mxu0 %v9452_v30 }
  0x47   :  { %9433 = vmatprep.subr.bf16.mxu1 %v9432_v42  ;;  %9457 = vmatprep.subr.bf16.mxu0 %v9456_v43 }
  0x48   :  { %8827 = vmatprep.mubr.f32.mxu1 %v9952_v13  ;;  %8860 = vmatprep.mubr.f32.mxu0 %v9952_v13 }
  0x4a   :  { %9435 = vmatpush3.bf16.msra.mxu1 %v9432_v42  ;;  %9459 = vmatpush3.bf16.msra.mxu0 %v9456_v43 }
  0x4b   :  { %9437 = vmatprep.subr.bf16.mxu1 %v9436_v44  ;;  %9461 = vmatprep.subr.bf16.mxu0 %v9420_v12 }
  0x4d   :  { %8828 = vmatmul.mubr.f32.vlgmr.msra.gmra.mrb[0].mxu1 %v9954_v14  ;;  %8861 = vmatmul.mubr.f32.vlgmr.msra.gmra.mrb[0].mxu0 %v9954_v14 }
  0x4e   :  { %9439 = vmatpush3.bf16.msra.mxu1 %v9436_v44  ;;  %9463 = vmatpush3.bf16.msra.mxu0 %v9420_v12 }
  0x4f   :  { %9441 = vmatprep.subr.bf16.mxu1 %v9440_v45  ;;  %9465 = vmatprep.subr.bf16.mxu0 %v9424_v16 }
  0x50   :  { %8838 = vmatprep.mubr.f32.mxu1 %v152_v20  ;;  %8871 = vmatprep.mubr.f32.mxu0 %v9952_v13 }
  0x52   :  { %9443 = vmatpush3.bf16.msra.mxu1 %v9440_v45  ;;  %9467 = vmatpush3.bf16.msra.mxu0 %v9424_v16 }
  0x53   :  { %8874 = vmatprep.subr.mxu1 %v9852_v46  ;;  %8934 = vmatprep.subr.mxu0 %v9852_v46 }
  0x55   :  { %8839 = vmatmul.mubr.f32.vlgmr.msra.gmra.mrb[0].mxu1 %v162_v21  ;;  %8872 = vmatmul.mubr.f32.vlgmr.msra.gmra.mrb[0].mxu0 %v9954_v14 }
  0x56   :  { %8876 = vmatprep.mubr.msk.f32.mxu1 %vm9853_vm1, %v9852_v46  ;;  %8936 = vmatprep.mubr.msk.f32.mxu0 %vm9853_vm1, %v9852_v46 }
 0x128   :  { %v8840_v48 = vpop.f32.mrb[0].mxu1  ;;  %v8873_v49 = vpop.f32.mrb[0].mxu0 }
 0x129   :  { %v9516_v50 = vadd.f32 %v8840_v48, %v8542_v47  ;;  %v344_v51 = vpop.f32.mrb[1].mxu1  ;;  %v600_v52 = vpop.f32.mrb[1].mxu0 }
 0x12a   :  { %v9518_v53 = vadd.f32 %v8542_v47, %v344_v51 }
 0x12b   :  { %v9973_v54 = vadd.f32 %v9516_v50, %v8873_v49 }
 0x12c   :  { %v9975_v55 = vadd.f32 %v9518_v53, %v600_v52 }
 0x12d   :  { %v1530_v58 = vsel %vm613_vm2, %v9973_v54, 0 }
 0x12e   :  { %2443 = vrot.lane.b32.xlu1 %v9975_v55, %s9854_s7  ;;  %611 = vrot.lane.b32.xlu0 %v9975_v55, %s9855_s2  ;;  %v614_v56 = vsel %vm613_vm2, %v9975_v55, 0  ;;  %v9998_v60 = vand.u32 4294901760, %v1530_v58 }
 0x12f   :  { %v9993_v57 = vand.u32 4294901760, %v614_v56 }
 0x130   :  { %v1601_v62 = vsub.f32 %v1530_v58, %v9998_v60 }
 0x131   :  { %v685_v59 = vsub.f32 %v614_v56, %v9993_v57 }
 0x132   :  { %2445 = vrot.lane.b32.xlu1 %v9975_v55, %s9856_s8  ;;  %1528 = vrot.lane.b32.xlu0 %v9973_v54, %s9855_s2  ;;  %v1602_v2 = vand.u32 4294901760, %v1601_v62 }
 0x133   :  { %v686_v61 = vand.u32 4294901760, %v685_v59 }
 0x134   :  { %v1603_v8 = vsub.f32 %v1601_v62, %v1602_v2 }
 0x135   :  { %v687_v1 = vsub.f32 %v685_v59, %v686_v61 }
 0x136   :  { %3362 = vrot.lane.b32.xlu1 %v9973_v54, %s9856_s8  ;;  %3360 = vrot.lane.b32.xlu0 %v9973_v54, %s9854_s7  ;;  %v1604_v13 = vand.u32 4294901760, %v1603_v8 }
 0x137   :  { %v688_v7 = vand.u32 4294901760, %v687_v1 }
 0x13a   :  { %4279 = vrot.lane.b32.xlu1 %v9975_v55, %s9857_s9  ;;  %4277 = vrot.lane.b32.xlu0 %v9975_v55, %s9858_s10 }
 0x13e   :  { %5196 = vrot.lane.b32.xlu1 %v9973_v54, %s9857_s9  ;;  %5194 = vrot.lane.b32.xlu0 %v9973_v54, %s9858_s10 }
 0x142   :  { %6113 = vrot.lane.b32.xlu1 %v9975_v55, %s9859_s11  ;;  %6111 = vrot.lane.b32.xlu0 %v9975_v55, %s9860_s12 }
 0x146   :  { %7030 = vrot.lane.b32.xlu1 %v9973_v54, %s9859_s11  ;;  %7028 = vrot.lane.b32.xlu0 %v9973_v54, %s9860_s12 }
 0x1a0   :  { %v612_v63 = vpop.permute.xlu0 %611  ;;  %v2444_v18 = vpop.permute.xlu1 %2443 }
 0x1a1   :  { %v616_v0 = vsel %vm613_vm2, %v612_v63, 0  ;;  %v2447_v20 = vsel %vm613_vm2, %v2444_v18, 0 }
 0x1a2   :  { %v619_v3 = vand.u32 4294901760, %v616_v0  ;;  %v2517_v22 = vand.u32 4294901760, %v2447_v20 }
 0x1a4   :  { %v696_v4 = vsub.f32 %v616_v0, %v619_v3  ;;  %8875 = vmatpush3.xpose.msra.mxu1 %v619_v3  ;;  %v1529_v5 = vpop.permute.xlu0 %1528  ;;  %v2446_v19 = vpop.permute.xlu1 %2445  ;;  %v2518_v24 = vsub.f32 %v2447_v20, %v2517_v22 }
 0x1a5   :  { %v1532_v6 = vsel %vm613_vm2, %v1529_v5, 0  ;;  %8879 = vmatprep.subr.mxu1 %v9852_v46  ;;  %v2449_v21 = vsel %vm613_vm2, %v2446_v19, 0 }
 0x1a6   :  { %v697_v9 = vand.u32 4294901760, %v696_v4  ;;  %v1535_v10 = vand.u32 4294901760, %v1532_v6  ;;  %v2452_v23 = vand.u32 4294901760, %v2449_v21  ;;  %v2519_v26 = vand.u32 4294901760, %v2518_v24 }
 0x1a7   :  { %8877 = vmatmul.mubr.f32.vlgmr.msra.gmra.mrb[2].mxu1 %v688_v7 }
 0x1a8   :  { %v698_v11 = vsub.f32 %v696_v4, %v697_v9  ;;  %v1612_v12 = vsub.f32 %v1532_v6, %v1535_v10  ;;  %8935 = vmatpush3.xpose.msra.mxu0 %v1535_v10  ;;  %8881 = vmatprep.mubr.msk.f32.mxu1 %vm9853_vm1, %v9852_v46  ;;  %v2529_v25 = vsub.f32 %v2449_v21, %v2452_v23  ;;  %v3361_v32 = vpop.permute.xlu0 %3360  ;;  %v3363_v33 = vpop.permute.xlu1 %3362 }
 0x1a9   :  { %8939 = vmatprep.subr.mxu0 %v9852_v46  ;;  %v2520_v28 = vsub.f32 %v2518_v24, %v2519_v26  ;;  %v3364_v34 = vsel %vm613_vm2, %v3361_v32, 0  ;;  %v3366_v35 = vsel %vm613_vm2, %v3363_v33, 0 }
 0x1aa   :  { %v699_v14 = vand.u32 4294901760, %v698_v11  ;;  %v1613_v15 = vand.u32 4294901760, %v1612_v12  ;;  %v2530_v27 = vand.u32 4294901760, %v2529_v25  ;;  %v3434_v36 = vand.u32 4294901760, %v3364_v34 }
 0x1ab   :  { %8937 = vmatmul.mubr.f32.vlgmr.msra.gmra.mrb[2].mxu0 %v1604_v13  ;;  %v2521_v30 = vand.u32 4294901760, %v2520_v28  ;;  %v3369_v37 = vand.u32 4294901760, %v3366_v35 }
 0x1ac   :  { %v1614_v16 = vsub.f32 %v1612_v12, %v1613_v15  ;;  %8880 = vmatpush3.xpose.msra.mxu1 %v699_v14  ;;  %8941 = vmatprep.mubr.msk.f32.mxu0 %vm9853_vm1, %v9852_v46  ;;  %v2531_v29 = vsub.f32 %v2529_v25, %v2530_v27  ;;  %v3435_v38 = vsub.f32 %v3364_v34, %v3434_v36  ;;  %v4278_v47 = vpop.permute.xlu0 %4277  ;;  %v4280_v48 = vpop.permute.xlu1 %4279 }
 0x1ad   :  { %8884 = vmatprep.subr.mxu1 %v9852_v46  ;;  %v3446_v39 = vsub.f32 %v3366_v35, %v3369_v37  ;;  %v4281_v49 = vsel %vm613_vm2, %v4278_v47, 0  ;;  %v4283_v50 = vsel %vm613_vm2, %v4280_v48, 0 }
 0x1ae   :  { %v1615_v17 = vand.u32 4294901760, %v1614_v16  ;;  %v2532_v31 = vand.u32 4294901760, %v2531_v29  ;;  %v3436_v40 = vand.u32 4294901760, %v3435_v38  ;;  %v4351_v51 = vand.u32 4294901760, %v4281_v49 }
 0x1af   :  { %8882 = vmatmul.mubr.f32.vlgmr.msra.gmra.mrb[2].mxu1 %v9993_v57  ;;  %v3447_v41 = vand.u32 4294901760, %v3446_v39  ;;  %v4286_v52 = vand.u32 4294901760, %v4283_v50 }
 0x1b0   :  { %8940 = vmatpush3.xpose.msra.mxu0 %v1615_v17  ;;  %8885 = vmatpush3.xpose.msra.mxu1 %v696_v4  ;;  %v3437_v42 = vsub.f32 %v3435_v38, %v3436_v40  ;;  %v4352_v53 = vsub.f32 %v4281_v49, %v4351_v51  ;;  %v5195_v63 = vpop.permute.xlu0 %5194  ;;  %v5197_v0 = vpop.permute.xlu1 %5196 }
 0x1b1   :  { %8944 = vmatprep.subr.mxu0 %v9852_v46  ;;  %8886 = vmatprep.mubr.msk.f32.mxu1 %vm9853_vm1, %v9852_v46  ;;  %v3448_v43 = vsub.f32 %v3446_v39, %v3447_v41  ;;  %v4363_v56 = vsub.f32 %v4283_v50, %v4286_v52  ;;  %v5198_v1 = vsel %vm613_vm2, %v5195_v63, 0 }
 0x1b2   :  { %8889 = vmatprep.subr.mxu1 %v9852_v46  ;;  %v3438_v44 = vand.u32 4294901760, %v3437_v42 }
 0x1b3   :  { %8942 = vmatmul.mubr.f32.vlgmr.msra.gmra.mrb[2].mxu0 %v9998_v60  ;;  %v3449_v45 = vand.u32 4294901760, %v3448_v43  ;;  %v4364_v58 = vand.u32 4294901760, %v4363_v56 }
 0x1b4   :  { %8945 = vmatpush3.xpose.msra.mxu0 %v1612_v12  ;;  %8946 = vmatprep.mubr.msk.f32.mxu0 %vm9853_vm1, %v9852_v46  ;;  %v6112_v13 = vpop.permute.xlu0 %6111  ;;  %v6114_v14 = vpop.permute.xlu1 %6113 }
 0x1b5   :  { %8949 = vmatprep.subr.mxu0 %v9852_v46  ;;  %v6117_v16 = vsel %vm613_vm2, %v6114_v14, 0 }
 0x1b6   :  { %v6120_v18 = vand.u32 4294901760, %v6117_v16 }
 0x1b7   :  { %8887 = vmatmul.mubr.f32.vlgmr.msra.gmra.mrb[2].mxu1 %v685_v59 }
 0x1b8   :  { %8890 = vmatpush3.xpose.msra.mxu1 %v619_v3  ;;  %8891 = vmatprep.mubr.msk.f32.mxu1 %vm9853_vm1, %v9852_v46  ;;  %v6197_v20 = vsub.f32 %v6117_v16, %v6120_v18  ;;  %v7031_v28 = vpop.permute.xlu1 %7030 }
 0x1b9   :  { %8894 = vmatprep.subr.mxu1 %v9852_v46 }
 0x1bb   :  { %8947 = vmatmul.mubr.f32.vlgmr.msra.gmra.mrb[2].mxu0 %v1601_v62 }
 0x1bc   :  { %8950 = vmatpush3.xpose.msra.mxu0 %v1535_v10  ;;  %8951 = vmatprep.mubr.msk.f32.mxu0 %vm9853_vm1, %v9852_v46 }
 0x1bd   :  { %8954 = vmatprep.subr.mxu0 %v9852_v46 }
 0x1bf   :  { %8892 = vmatmul.mubr.f32.vlgmr.msra.gmra.mrb[2].mxu1 %v686_v61 }
 0x1c0   :  { %8895 = vmatpush3.xpose.msra.mxu1 %v697_v9  ;;  %8896 = vmatprep.mubr.msk.f32.mxu1 %vm9853_vm1, %v9852_v46 }
 0x1c1   :  { %8899 = vmatprep.subr.mxu1 %v9852_v46 }
 0x1c3   :  { %8952 = vmatmul.mubr.f32.vlgmr.msra.gmra.mrb[2].mxu0 %v1602_v2  ;;  %v5200_v2 = vsel %vm613_vm2, %v5197_v0, 0 }
 0x1c4   :  { %8955 = vmatpush3.xpose.msra.mxu0 %v1613_v15  ;;  %8956 = vmatprep.mubr.msk.f32.mxu0 %vm9853_vm1, %v9852_v46  ;;  %v5203_v4 = vand.u32 4294901760, %v5200_v2  ;;  %v6115_v15 = vsel %vm613_vm2, %v6112_v13, 0 }
 0x1c5   :  { %8959 = vmatprep.subr.mxu0 %v9852_v46  ;;  %v6185_v17 = vand.u32 4294901760, %v6115_v15 }
 0x1c6   :  { %v5280_v6 = vsub.f32 %v5200_v2, %v5203_v4 }
 0x1c7   :  { %8897 = vmatmul.mubr.f32.vlgmr.msra.gmra.mrb[2].mxu1 %v9993_v57  ;;  %v6186_v19 = vsub.f32 %v6115_v15, %v6185_v17 }
 0x1c8   :  { %8900 = vmatpush3.xpose.msra.mxu1 %v619_v3  ;;  %8901 = vmatprep.mubr.msk.f32.mxu1 %vm9853_vm1, %v9852_v46  ;;  %v5268_v3 = vand.u32 4294901760, %v5198_v1  ;;  %v5281_v8 = vand.u32 4294901760, %v5280_v6 }
 0x1c9   :  { %8904 = vmatprep.subr.mxu1 %v9852_v46  ;;  %v6187_v21 = vand.u32 4294901760, %v6186_v19 }
 0x1ca   :  { %v5269_v5 = vsub.f32 %v5198_v1, %v5268_v3 }
 0x1cb   :  { %8957 = vmatmul.mubr.f32.vlgmr.msra.gmra.mrb[2].mxu0 %v9998_v60 }
 0x1cc   :  { %8960 = vmatpush3.xpose.msra.mxu0 %v1535_v10  ;;  %8961 = vmatprep.mubr.msk.f32.mxu0 %vm9853_vm1, %v9852_v46  ;;  %v5270_v7 = vand.u32 4294901760, %v5269_v5  ;;  %v5282_v10 = vsub.f32 %v5280_v6, %v5281_v8 }
 0x1cd   :  { %8994 = vmatprep.subr.mxu0 %v9852_v46 }
 0x1ce   :  { %v5271_v9 = vsub.f32 %v5269_v5, %v5270_v7  ;;  %v5283_v12 = vand.u32 4294901760, %v5282_v10 }
 0x1cf   :  { %8902 = vmatmul.mubr.f32.vlgmr.msra.gmra.mrb[2].mxu1 %v9993_v57  ;;  %v4353_v57 = vand.u32 4294901760, %v4352_v53 }
 0x1d0   :  { %8906 = vmatprep.mubr.msk.f32.mxu1 %vm9853_vm1, %v9852_v46  ;;  %v5272_v11 = vand.u32 4294901760, %v5271_v9 }
 0x1d1   :  { %v4354_v59 = vsub.f32 %v4352_v53, %v4353_v57 }
 0x1d3   :  { %8962 = vmatmul.mubr.f32.vlgmr.msra.gmra.mrb[2].mxu0 %v9998_v60  ;;  %v4365_v60 = vsub.f32 %v4363_v56, %v4364_v58  ;;  %v4355_v61 = vand.u32 4294901760, %v4354_v59 }
 0x1d4   :  { %8995 = vmatpush3.xpose.msra.mxu0 %v2452_v23  ;;  %8996 = vmatprep.mubr.msk.f32.mxu0 %vm9853_vm1, %v9852_v46 }
 0x1d5   :  { %8999 = vmatprep.subr.mxu0 %v9852_v46  ;;  %v4366_v62 = vand.u32 4294901760, %v4365_v60 }
 0x1d7   :  { %8997 = vmatmul.mubr.f32.vlgmr.msra.gmra.mrb[4].mxu0 %v2521_v30  ;;  %v7034_v30 = vsel %vm613_vm2, %v7031_v28, 0 }
 0x1d8   :  { %9000 = vmatpush3.xpose.msra.mxu0 %v2532_v31  ;;  %9001 = vmatprep.mubr.msk.f32.mxu0 %vm9853_vm1, %v9852_v46  ;;  %v7037_v32 = vand.u32 4294901760, %v7034_v30 }
 0x1d9   :  { %9004 = vmatprep.subr.mxu0 %v9852_v46 }
 0x1df   :  { %9002 = vmatmul.mubr.f32.vlgmr.msra.gmra.mrb[4].mxu0 %v2517_v22 }
 0x1e0   :  { %9005 = vmatpush3.xpose.msra.mxu0 %v2529_v25  ;;  %9006 = vmatprep.mubr.msk.f32.mxu0 %vm9853_vm1, %v9852_v46 }
 0x1e1   :  { %9009 = vmatprep.subr.mxu0 %v9852_v46 }
 0x1e7   :  { %9007 = vmatmul.mubr.f32.vlgmr.msra.gmra.mrb[4].mxu0 %v2518_v24 }
 0x1e8   :  { %9010 = vmatpush3.xpose.msra.mxu0 %v2452_v23  ;;  %9011 = vmatprep.mubr.msk.f32.mxu0 %vm9853_vm1, %v9852_v46 }
 0x1e9   :  { %9014 = vmatprep.subr.mxu0 %v9852_v46 }
 0x1ef   :  { %9012 = vmatmul.mubr.f32.vlgmr.msra.gmra.mrb[4].mxu0 %v2519_v26 }
 0x1f0   :  { %9015 = vmatpush3.xpose.msra.mxu0 %v2530_v27  ;;  %9016 = vmatprep.mubr.msk.f32.mxu0 %vm9853_vm1, %v9852_v46  ;;  %v7029_v27 = vpop.permute.xlu0 %7028 }
 0x1f1   :  { %9019 = vmatprep.subr.mxu0 %v9852_v46  ;;  %v7032_v29 = vsel %vm613_vm2, %v7029_v27, 0 }
 0x1f2   :  { %v7102_v31 = vand.u32 4294901760, %v7032_v29 }
 0x1f7   :  { %9017 = vmatmul.mubr.f32.vlgmr.msra.gmra.mrb[4].mxu0 %v2517_v22 }
 0x1f8   :  { %9020 = vmatpush3.xpose.msra.mxu0 %v2452_v23  ;;  %9021 = vmatprep.mubr.msk.f32.mxu0 %vm9853_vm1, %v9852_v46  ;;  %v6188_v23 = vsub.f32 %v6186_v19, %v6187_v21 }
 0x1f9   :  { %9054 = vmatprep.subr.mxu0 %v9852_v46 }
 0x1fa   :  { %v6189_v25 = vand.u32 4294901760, %v6188_v23 }
 0x1ff   :  { %9022 = vmatmul.mubr.f32.vlgmr.msra.gmra.mrb[4].mxu0 %v2517_v22  ;;  %v6198_v22 = vand.u32 4294901760, %v6197_v20 }
 0x200   :  { %9055 = vmatpush3.xpose.msra.mxu0 %v3369_v37  ;;  %9056 = vmatprep.mubr.msk.f32.mxu0 %vm9853_vm1, %v9852_v46 }
 0x201   :  { %9059 = vmatprep.subr.mxu0 %v9852_v46  ;;  %v6199_v24 = vsub.f32 %v6197_v20, %v6198_v22 }
 0x203   :  { %9057 = vmatmul.mubr.f32.vlgmr.msra.gmra.mrb[6].mxu0 %v3438_v44  ;;  %v6200_v26 = vand.u32 4294901760, %v6199_v24 }
 0x204   :  { %9060 = vmatpush3.xpose.msra.mxu0 %v3449_v45  ;;  %9061 = vmatprep.mubr.msk.f32.mxu0 %vm9853_vm1, %v9852_v46 }
 0x205   :  { %9064 = vmatprep.subr.mxu0 %v9852_v46 }
 0x20b   :  { %9062 = vmatmul.mubr.f32.vlgmr.msra.gmra.mrb[6].mxu0 %v3434_v36 }
 0x20c   :  { %9065 = vmatpush3.xpose.msra.mxu0 %v3446_v39  ;;  %9066 = vmatprep.mubr.msk.f32.mxu0 %vm9853_vm1, %v9852_v46 }
 0x20d   :  { %9069 = vmatprep.subr.mxu0 %v9852_v46 }
 0x213   :  { %9067 = vmatmul.mubr.f32.vlgmr.msra.gmra.mrb[6].mxu0 %v3435_v38 }
 0x214   :  { %9070 = vmatpush3.xpose.msra.mxu0 %v3369_v37  ;;  %9071 = vmatprep.mubr.msk.f32.mxu0 %vm9853_vm1, %v9852_v46 }
 0x215   :  { %9074 = vmatprep.subr.mxu0 %v9852_v46 }
 0x21b   :  { %9072 = vmatmul.mubr.f32.vlgmr.msra.gmra.mrb[6].mxu0 %v3436_v40 }
 0x21c   :  { %9075 = vmatpush3.xpose.msra.mxu0 %v3447_v41  ;;  %9076 = vmatprep.mubr.msk.f32.mxu0 %vm9853_vm1, %v9852_v46 }
 0x21d   :  { %9079 = vmatprep.subr.mxu0 %v9852_v46 }
 0x223   :  { %9077 = vmatmul.mubr.f32.vlgmr.msra.gmra.mrb[6].mxu0 %v3434_v36 }
 0x224   :  { %9080 = vmatpush3.xpose.msra.mxu0 %v3369_v37  ;;  %9081 = vmatprep.mubr.msk.f32.mxu0 %vm9853_vm1, %v9852_v46  ;;  %v7114_v37 = vsub.f32 %v7034_v30, %v7037_v32 }
 0x225   :  { %9114 = vmatprep.subr.mxu0 %v9852_v46 }
 0x226   :  { %v7115_v42 = vand.u32 4294901760, %v7114_v37 }
 0x228   :  { %v7116_v44 = vsub.f32 %v7114_v37, %v7115_v42 }
 0x22a   :  { %v7117_v47 = vand.u32 4294901760, %v7116_v44 }
 0x22b   :  { %9082 = vmatmul.mubr.f32.vlgmr.msra.gmra.mrb[6].mxu0 %v3434_v36  ;;  %v7103_v36 = vsub.f32 %v7032_v29, %v7102_v31 }
 0x22c   :  { %9115 = vmatpush3.xpose.msra.mxu0 %v4286_v52  ;;  %9116 = vmatprep.mubr.msk.f32.mxu0 %vm9853_vm1, %v9852_v46 }
 0x22d   :  { %9119 = vmatprep.subr.mxu0 %v9852_v46  ;;  %v7104_v41 = vand.u32 4294901760, %v7103_v36 }
 0x22f   :  { %9117 = vmatmul.mubr.f32.vlgmr.msra.gmra.mrb[8].mxu0 %v4355_v61  ;;  %v7105_v43 = vsub.f32 %v7103_v36, %v7104_v41 }
 0x230   :  { %9120 = vmatpush3.xpose.msra.mxu0 %v4366_v62  ;;  %9121 = vmatprep.mubr.msk.f32.mxu0 %vm9853_vm1, %v9852_v46 }
 0x231   :  { %9124 = vmatprep.subr.mxu0 %v9852_v46  ;;  %v7106_v45 = vand.u32 4294901760, %v7105_v43 }
 0x237   :  { %9122 = vmatmul.mubr.f32.vlgmr.msra.gmra.mrb[8].mxu0 %v4351_v51 }
 0x238   :  { %9125 = vmatpush3.xpose.msra.mxu0 %v4363_v56  ;;  %9126 = vmatprep.mubr.msk.f32.mxu0 %vm9853_vm1, %v9852_v46 }
 0x239   :  { %9129 = vmatprep.subr.mxu0 %v9852_v46 }
 0x23f   :  { %9127 = vmatmul.mubr.f32.vlgmr.msra.gmra.mrb[8].mxu0 %v4352_v53 }
 0x240   :  { %9130 = vmatpush3.xpose.msra.mxu0 %v4286_v52  ;;  %9131 = vmatprep.mubr.msk.f32.mxu0 %vm9853_vm1, %v9852_v46 }
 0x241   :  { %9134 = vmatprep.subr.mxu0 %v9852_v46 }
 0x247   :  { %9132 = vmatmul.mubr.f32.vlgmr.msra.gmra.mrb[8].mxu0 %v4353_v57 }
 0x248   :  { %9135 = vmatpush3.xpose.msra.mxu0 %v4364_v58  ;;  %9136 = vmatprep.mubr.msk.f32.mxu0 %vm9853_vm1, %v9852_v46 }
 0x249   :  { %9139 = vmatprep.subr.mxu0 %v9852_v46 }
 0x24f   :  { %9137 = vmatmul.mubr.f32.vlgmr.msra.gmra.mrb[8].mxu0 %v4351_v51 }
 0x250   :  { %9140 = vmatpush3.xpose.msra.mxu0 %v4286_v52  ;;  %9141 = vmatprep.mubr.msk.f32.mxu0 %vm9853_vm1, %v9852_v46 }
 0x251   :  { %9174 = vmatprep.subr.mxu0 %v9852_v46 }
 0x257   :  { %9142 = vmatmul.mubr.f32.vlgmr.msra.gmra.mrb[8].mxu0 %v4351_v51 }
 0x258   :  { %9175 = vmatpush3.xpose.msra.mxu0 %v5203_v4  ;;  %9176 = vmatprep.mubr.msk.f32.mxu0 %vm9853_vm1, %v9852_v46 }
 0x259   :  { %9179 = vmatprep.subr.mxu0 %v9852_v46 }
 0x25b   :  { %9177 = vmatmul.mubr.f32.vlgmr.msra.gmra.mrb[10].mxu0 %v5272_v11 }
 0x25c   :  { %9180 = vmatpush3.xpose.msra.mxu0 %v5283_v12  ;;  %9181 = vmatprep.mubr.msk.f32.mxu0 %vm9853_vm1, %v9852_v46 }
 0x25d   :  { %9184 = vmatprep.subr.mxu0 %v9852_v46 }
 0x263   :  { %9182 = vmatmul.mubr.f32.vlgmr.msra.gmra.mrb[10].mxu0 %v5268_v3 }
 0x264   :  { %9185 = vmatpush3.xpose.msra.mxu0 %v5280_v6  ;;  %9186 = vmatprep.mubr.msk.f32.mxu0 %vm9853_vm1, %v9852_v46 }
 0x265   :  { %9189 = vmatprep.subr.mxu0 %v9852_v46 }
 0x26b   :  { %9187 = vmatmul.mubr.f32.vlgmr.msra.gmra.mrb[10].mxu0 %v5269_v5 }
 0x26c   :  { %9190 = vmatpush3.xpose.msra.mxu0 %v5203_v4  ;;  %9191 = vmatprep.mubr.msk.f32.mxu0 %vm9853_vm1, %v9852_v46 }
 0x26d   :  { %9194 = vmatprep.subr.mxu0 %v9852_v46 }
 0x273   :  { %9192 = vmatmul.mubr.f32.vlgmr.msra.gmra.mrb[10].mxu0 %v5270_v7 }
 0x274   :  { %9195 = vmatpush3.xpose.msra.mxu0 %v5281_v8  ;;  %9196 = vmatprep.mubr.msk.f32.mxu0 %vm9853_vm1, %v9852_v46 }
 0x275   :  { %9199 = vmatprep.subr.mxu0 %v9852_v46 }
 0x27b   :  { %9197 = vmatmul.mubr.f32.vlgmr.msra.gmra.mrb[10].mxu0 %v5268_v3 }
 0x27c   :  { %9200 = vmatpush3.xpose.msra.mxu0 %v5203_v4  ;;  %9201 = vmatprep.mubr.msk.f32.mxu0 %vm9853_vm1, %v9852_v46 }
 0x27d   :  { %9234 = vmatprep.subr.mxu0 %v9852_v46 }
 0x283   :  { %9202 = vmatmul.mubr.f32.vlgmr.msra.gmra.mrb[10].mxu0 %v5268_v3 }
 0x284   :  { %9235 = vmatpush3.xpose.msra.mxu0 %v6120_v18  ;;  %9236 = vmatprep.mubr.msk.f32.mxu0 %vm9853_vm1, %v9852_v46 }
 0x285   :  { %9239 = vmatprep.subr.mxu0 %v9852_v46 }
 0x287   :  { %9237 = vmatmul.mubr.f32.vlgmr.msra.gmra.mrb[12].mxu0 %v6189_v25 }
 0x288   :  { %9240 = vmatpush3.xpose.msra.mxu0 %v6200_v26  ;;  %9241 = vmatprep.mubr.msk.f32.mxu0 %vm9853_vm1, %v9852_v46 }
 0x289   :  { %9244 = vmatprep.subr.mxu0 %v9852_v46 }
 0x28f   :  { %9242 = vmatmul.mubr.f32.vlgmr.msra.gmra.mrb[12].mxu0 %v6185_v17 }
 0x290   :  { %9245 = vmatpush3.xpose.msra.mxu0 %v6197_v20  ;;  %9246 = vmatprep.mubr.msk.f32.mxu0 %vm9853_vm1, %v9852_v46 }
 0x291   :  { %9249 = vmatprep.subr.mxu0 %v9852_v46 }
 0x297   :  { %9247 = vmatmul.mubr.f32.vlgmr.msra.gmra.mrb[12].mxu0 %v6186_v19 }
 0x298   :  { %9250 = vmatpush3.xpose.msra.mxu0 %v6120_v18  ;;  %9251 = vmatprep.mubr.msk.f32.mxu0 %vm9853_vm1, %v9852_v46 }
 0x299   :  { %9254 = vmatprep.subr.mxu0 %v9852_v46 }
 0x29f   :  { %9252 = vmatmul.mubr.f32.vlgmr.msra.gmra.mrb[12].mxu0 %v6187_v21 }
 0x2a0   :  { %9255 = vmatpush3.xpose.msra.mxu0 %v6198_v22  ;;  %9256 = vmatprep.mubr.msk.f32.mxu0 %vm9853_vm1, %v9852_v46 }
 0x2a1   :  { %9259 = vmatprep.subr.mxu0 %v9852_v46 }
 0x2a2   :  { %v1060_v33 = vpop.f32.mrb[2].mxu1 }
 0x2a3   :  { %v8903_v34 = vpop.f32.mrb[3].mxu1  ;;  %v1064_v35 = vsel %vm613_vm2, %v1060_v33, -inf }
 0x2a4   :  { %1065 = vmax.xlane.f32.xlu0 %v1064_v35 }
 0x2a6   :  { %v1976_v38 = vpop.f32.mrb[2].mxu0 }
 0x2a7   :  { %v8963_v39 = vpop.f32.mrb[3].mxu0  ;;  %9257 = vmatmul.mubr.f32.vlgmr.msra.gmra.mrb[12].mxu0 %v6185_v17  ;;  %v1980_v40 = vsel %vm613_vm2, %v1976_v38, -inf }
 0x2a8   :  { %9260 = vmatpush3.xpose.msra.mxu0 %v6120_v18  ;;  %1981 = vmax.xlane.f32.xlu1 %v1980_v40 }
 0x2a9   :  { %9261 = vmatprep.mubr.msk.f32.mxu0 %vm9853_vm1, %v9852_v46  ;;  %9294 = vmatprep.subr.mxu0 %v9852_v46 }
 0x2af   :  { %9262 = vmatmul.mubr.f32.vlgmr.msra.gmra.mrb[12].mxu0 %v6185_v17 }
 0x2b0   :  { %9295 = vmatpush3.xpose.msra.mxu0 %v7037_v32  ;;  %9296 = vmatprep.mubr.msk.f32.mxu0 %vm9853_vm1, %v9852_v46 }
 0x2b1   :  { %9299 = vmatprep.subr.mxu0 %v9852_v46 }
 0x2b3   :  { %9297 = vmatmul.mubr.f32.vlgmr.msra.gmra.mrb[14].mxu0 %v7106_v45 }
 0x2b4   :  { %9300 = vmatpush3.xpose.msra.mxu0 %v7117_v47  ;;  %9301 = vmatprep.mubr.msk.f32.mxu0 %vm9853_vm1, %v9852_v46 }
 0x2b5   :  { %9304 = vmatprep.subr.mxu0 %v9852_v46 }
 0x2b9   :  { %1075 = vrot.lane.b32.xlu1 %v9975_v55, %s9861_s13 }
 0x2bb   :  { %9302 = vmatmul.mubr.f32.vlgmr.msra.gmra.mrb[14].mxu0 %v7102_v31 }
 0x2bc   :  { %9305 = vmatpush3.xpose.msra.mxu0 %v7114_v37  ;;  %9306 = vmatprep.mubr.msk.f32.mxu0 %vm9853_vm1, %v9852_v46 }
 0x2bd   :  { %9309 = vmatprep.subr.mxu0 %v9852_v46 }
 0x2c3   :  { %9307 = vmatmul.mubr.f32.vlgmr.msra.gmra.mrb[14].mxu0 %v7103_v36 }
 0x2c4   :  { %9310 = vmatpush3.xpose.msra.mxu0 %v7037_v32  ;;  %9311 = vmatprep.mubr.msk.f32.mxu0 %vm9853_vm1, %v9852_v46 }
 0x2c5   :  { %9314 = vmatprep.subr.mxu0 %v9852_v46 }
 0x2cb   :  { %9312 = vmatmul.mubr.f32.vlgmr.msra.gmra.mrb[14].mxu0 %v7104_v41 }
 0x2cc   :  { %9315 = vmatpush3.xpose.msra.mxu0 %v7115_v42  ;;  %9316 = vmatprep.mubr.msk.f32.mxu0 %vm9853_vm1, %v9852_v46 }
 0x2cd   :  { %9319 = vmatprep.subr.mxu0 %v9852_v46 }
 0x2d2   :  { %v2893_v48 = vpop.f32.mrb[4].mxu0 }
 0x2d3   :  { %v9023_v49 = vpop.f32.mrb[5].mxu0  ;;  %9317 = vmatmul.mubr.f32.vlgmr.msra.gmra.mrb[14].mxu0 %v7102_v31  ;;  %v2897_v2 = vsel %vm613_vm2, %v2893_v48, -inf }
 0x2d4   :  { %9320 = vmatpush3.xpose.msra.mxu0 %v7037_v32  ;;  %9321 = vmatprep.mubr.msk.f32.mxu0 %vm9853_vm1, %v9852_v46 }
 0x2db   :  { %9322 = vmatmul.mubr.f32.vlgmr.msra.gmra.mrb[14].mxu0 %v7102_v31 }
 0x2fe   :  { %v3810_v50 = vpop.f32.mrb[6].mxu0 }
 0x2ff   :  { %v9083_v51 = vpop.f32.mrb[7].mxu0  ;;  %v3814_v5 = vsel %vm613_vm2, %v3810_v50, -inf }
 0x32a   :  { %v10166_v52 = vpop.f32.mrb[8].mxu0 }
 0x32b   :  { %v9143_v53 = vpop.f32.mrb[9].mxu0  ;;  %v4731_v9 = vsel %vm613_vm2, %v10166_v52, -inf }
 0x331   :  { %v1066_v56 = vpop.xlane.xlu0 %1065 }
 0x332   :  { %v1067_v57 = vsub.f32 %v1060_v33, %v1066_v56 }
 0x334   :  { %v1068_v58 = vmul.f32 1.442695, %v1067_v57 }
 0x335   :  { %v1982_v59 = vpop.xlane.xlu1 %1981 }
 0x336   :  { %9721 = vpow2.f32 %v1068_v58  ;;  %v1983_v60 = vsub.f32 %v1976_v38, %v1982_v59 }
 0x338   :  { %v1984_v61 = vmul.f32 1.442695, %v1983_v60 }
 0x339   :  { %v1076_v62 = vpop.permute.xlu1 %1075 }
 0x33a   :  { %v10168_v63 = vand.u32 4294901760, %v1076_v62  ;;  %9723 = vpow2.f32 %v1984_v61 }
 0x33c   :  { %8905 = vmatpush3.msra.mxu1 %v10168_v63  ;;  %v1159_v19 = vsub.f32 %v1076_v62, %v10168_v63 }
 0x33d   :  { %8909 = vmatprep.subr.mxu1 %v9852_v46 }
 0x33e   :  { %v1160_v26 = vand.u32 4294901760, %v1159_v19 }
 0x340   :  { %v9722_v0 = vpop.eup %9721  ;;  %v1161_v30 = vsub.f32 %v1159_v19, %v1160_v26 }
 0x341   :  { %v1070_v1 = vsel %vm613_vm2, %v9722_v0, 0.0 }
 0x342   :  { %1071 = vadd.xlane.f32.xlu0 %v1070_v1  ;;  %v1162_v34 = vand.u32 4294901760, %v1161_v30 }
 0x344   :  { %v10174_v3 = vpop.eup %9723 }
 0x345   :  { %v1986_v4 = vsel %vm613_vm2, %v10174_v3, 0.0 }
 0x346   :  { %2898 = vmax.xlane.f32.xlu0 %v2897_v2 }
 0x34a   :  { %1987 = vadd.xlane.f32.xlu0 %v1986_v4 }
 0x34e   :  { %3815 = vmax.xlane.f32.xlu0 %v3814_v5 }
 0x356   :  { %v10179_v6 = vpop.f32.mrb[10].mxu0 }
 0x357   :  { %v9203_v7 = vpop.f32.mrb[11].mxu0  ;;  %v5648_v37 = vsel %vm613_vm2, %v10179_v6, -inf }
 0x364   :  { %1991 = vrot.lane.b32.xlu0 %v9973_v54, %s9861_s13 }
 0x382   :  { %v10183_v8 = vpop.f32.mrb[12].mxu0 }
 0x383   :  { %v9263_v10 = vpop.f32.mrb[13].mxu0  ;;  %4732 = vmax.xlane.f32.xlu0 %v4731_v9 }
 0x3ae   :  { %v10187_v11 = vpop.f32.mrb[14].mxu0 }
 0x3af   :  { %v9323_v12 = vpop.f32.mrb[15].mxu0  ;;  %v7482_v60 = vsel %vm613_vm2, %v10187_v11, -inf }
 0x3cf   :  { %v1072_v13 = vpop.xlane.xlu0 %1071 }
 0x3d0   :  { %9725 = vrcp.f32 %v1072_v13 }
 0x3d3   :  { %v2899_v14 = vpop.xlane.xlu0 %2898 }
 0x3d4   :  { %v2900_v15 = vsub.f32 %v2893_v48, %v2899_v14 }
 0x3d6   :  { %v2901_v16 = vmul.f32 1.442695, %v2900_v15 }
 0x3d7   :  { %v1988_v17 = vpop.xlane.xlu0 %1987 }
 0x3d8   :  { %9727 = vpow2.f32 %v2901_v16 }
 0x3da   :  { %v9726_v18 = vpop.eup %9725 }
 0x3db   :  { %v1074_v20 = vmul.f32 %v9726_v18, %v9722_v0  ;;  %v3816_v21 = vpop.xlane.xlu0 %3815 }
 0x3dc   :  { %v3817_v22 = vsub.f32 %v3810_v50, %v3816_v21 }
 0x3dd   :  { %v1079_v23 = vsel %vm613_vm2, %v1074_v20, 0 }
 0x3de   :  { %v3818_v24 = vmul.f32 1.442695, %v3817_v22  ;;  %v1147_v25 = vand.u32 4294901760, %v1079_v23 }
 0x3df   :  { %v1992_v41 = vpop.permute.xlu0 %1991 }
 0x3e0   :  { %9729 = vpow2.f32 %v3818_v24  ;;  %v1148_v27 = vsub.f32 %v1079_v23, %v1147_v25  ;;  %v1998_v43 = vand.u32 4294901760, %v1992_v41 }
 0x3e1   :  { %9731 = vrcp.f32 %v1988_v17 }
 0x3e2   :  { %v10191_v28 = vpop.eup %9727  ;;  %v1149_v29 = vand.u32 4294901760, %v1148_v27  ;;  %v2075_v45 = vsub.f32 %v1992_v41, %v1998_v43 }
 0x3e3   :  { %v2903_v31 = vsel %vm613_vm2, %v10191_v28, 0.0 }
 0x3e4   :  { %2904 = vadd.xlane.f32.xlu1 %v2903_v31  ;;  %v1150_v32 = vsub.f32 %v1148_v27, %v1149_v29  ;;  %v2076_v48 = vand.u32 4294901760, %v2075_v45 }
 0x3e6   :  { %v1151_v33 = vand.u32 4294901760, %v1150_v32  ;;  %v2077_v50 = vsub.f32 %v2075_v45, %v2076_v48 }
 0x3e8   :  { %8907 = vmatmul.mubr.f32.vlgmr.msra.gmra.mrb[4].mxu1 %v1151_v33  ;;  %v2078_v57 = vand.u32 4294901760, %v2077_v50 }
 0x3e9   :  { %8910 = vmatpush3.msra.mxu1 %v1162_v34  ;;  %8911 = vmatprep.mubr.msk.f32.mxu1 %vm9853_vm1, %v9852_v46 }
 0x3ea   :  { %v10197_v35 = vpop.eup %9729  ;;  %8914 = vmatprep.subr.mxu1 %v9852_v46 }
 0x3eb   :  { %v3820_v36 = vsel %vm613_vm2, %v10197_v35, 0.0  ;;  %v9732_v38 = vpop.eup %9731 }
 0x3ec   :  { %3821 = vadd.xlane.f32.xlu0 %v3820_v36  ;;  %v1990_v39 = vmul.f32 %v9732_v38, %v10174_v3 }
 0x3ee   :  { %v1995_v40 = vsel %vm613_vm2, %v1990_v39, 0 }
 0x3ef   :  { %v2063_v42 = vand.u32 4294901760, %v1995_v40 }
 0x3f0   :  { %8912 = vmatmul.mubr.f32.vlgmr.msra.gmra.mrb[4].mxu1 %v1147_v25  ;;  %5649 = vmax.xlane.f32.xlu0 %v5648_v37 }
 0x3f1   :  { %8915 = vmatpush3.msra.mxu1 %v1159_v19  ;;  %8916 = vmatprep.mubr.msk.f32.mxu1 %vm9853_vm1, %v9852_v46  ;;  %v2064_v44 = vsub.f32 %v1995_v40, %v2063_v42 }
 0x3f2   :  { %8919 = vmatprep.subr.mxu1 %v9852_v46 }
 0x3f3   :  { %v2065_v47 = vand.u32 4294901760, %v2064_v44 }
 0x3f5   :  { %2908 = vrot.lane.b32.xlu1 %v9975_v55, %s9862_s14  ;;  %v2066_v49 = vsub.f32 %v2064_v44, %v2065_v47 }
 0x3f7   :  { %v2067_v56 = vand.u32 4294901760, %v2066_v49 }
 0x3f8   :  { %8917 = vmatmul.mubr.f32.vlgmr.msra.gmra.mrb[4].mxu1 %v1148_v27 }
 0x3f9   :  { %8920 = vmatpush3.msra.mxu1 %v10168_v63  ;;  %3825 = vrot.lane.b32.xlu1 %v9973_v54, %s9862_s14 }
 0x3fa   :  { %8921 = vmatprep.mubr.msk.f32.mxu1 %vm9853_vm1, %v9852_v46  ;;  %8924 = vmatprep.subr.mxu1 %v9852_v46 }
 0x400   :  { %8922 = vmatmul.mubr.f32.vlgmr.msra.gmra.mrb[4].mxu1 %v1149_v29 }
 0x401   :  { %8925 = vmatpush3.msra.mxu1 %v1160_v26  ;;  %8926 = vmatprep.mubr.msk.f32.mxu1 %vm9853_vm1, %v9852_v46 }
 0x402   :  { %8929 = vmatprep.subr.mxu1 %v9852_v46 }
 0x408   :  { %8927 = vmatmul.mubr.f32.vlgmr.msra.gmra.mrb[4].mxu1 %v1147_v25 }
 0x409   :  { %8930 = vmatpush3.msra.mxu1 %v10168_v63  ;;  %8931 = vmatprep.mubr.msk.f32.mxu1 %vm9853_vm1, %v9852_v46 }
 0x40a   :  { %8964 = vmatprep.subr.mxu1 %v9852_v46 }
 0x410   :  { %8932 = vmatmul.mubr.f32.vlgmr.msra.gmra.mrb[4].mxu1 %v1147_v25  ;;  %v4733_v51 = vpop.xlane.xlu0 %4732 }
 0x411   :  { %8965 = vmatpush3.msra.mxu1 %v1998_v43  ;;  %v4734_v53 = vsub.f32 %v10166_v52, %v4733_v51  ;;  %8966 = vmatprep.mubr.msk.f32.mxu1 %vm9853_vm1, %v9852_v46  ;;  %v6565_v52 = vsel %vm613_vm2, %v10183_v8, -inf }
 0x412   :  { %8969 = vmatprep.subr.mxu1 %v9852_v46 }
 0x413   :  { %v4735_v58 = vmul.f32 1.442695, %v4734_v53 }
 0x414   :  { %8967 = vmatmul.mubr.f32.vlgmr.msra.gmra.mrb[6].mxu1 %v2067_v56 }
 0x415   :  { %9733 = vpow2.f32 %v4735_v58  ;;  %8970 = vmatpush3.msra.mxu1 %v2078_v57  ;;  %8971 = vmatprep.mubr.msk.f32.mxu1 %vm9853_vm1, %v9852_v46 }
 0x416   :  { %8974 = vmatprep.subr.mxu1 %v9852_v46 }
 0x41c   :  { %8972 = vmatmul.mubr.f32.vlgmr.msra.gmra.mrb[6].mxu1 %v2063_v42 }
 0x41d   :  { %8975 = vmatpush3.msra.mxu1 %v2075_v45  ;;  %6566 = vmax.xlane.f32.xlu1 %v6565_v52 }
 0x41e   :  { %8976 = vmatprep.mubr.msk.f32.mxu1 %vm9853_vm1, %v9852_v46  ;;  %8979 = vmatprep.subr.mxu1 %v9852_v46 }
 0x41f   :  { %v10234_v59 = vpop.eup %9733 }
 0x420   :  { %v4737_v61 = vsel %vm613_vm2, %v10234_v59, 0.0 }
 0x421   :  { %7483 = vmax.xlane.f32.xlu1 %v7482_v60  ;;  %4738 = vadd.xlane.f32.xlu0 %v4737_v61 }
 0x424   :  { %8977 = vmatmul.mubr.f32.vlgmr.msra.gmra.mrb[6].mxu1 %v2064_v44 }
 0x425   :  { %8980 = vmatpush3.msra.mxu1 %v1998_v43  ;;  %8981 = vmatprep.mubr.msk.f32.mxu1 %vm9853_vm1, %v9852_v46 }
 0x426   :  { %8984 = vmatprep.subr.mxu1 %v9852_v46 }
 0x42c   :  { %8982 = vmatmul.mubr.f32.vlgmr.msra.gmra.mrb[6].mxu1 %v2065_v47 }
 0x42d   :  { %8985 = vmatpush3.msra.mxu1 %v2076_v48  ;;  %8986 = vmatprep.mubr.msk.f32.mxu1 %vm9853_vm1, %v9852_v46 }
 0x42e   :  { %8989 = vmatprep.subr.mxu1 %v9852_v46 }
 0x432   :  { %5659 = vrot.lane.b32.xlu1 %v9973_v54, %s9863_s15 }
 0x434   :  { %8987 = vmatmul.mubr.f32.vlgmr.msra.gmra.mrb[6].mxu1 %v2063_v42 }
 0x435   :  { %8990 = vmatpush3.msra.mxu1 %v1998_v43  ;;  %8991 = vmatprep.mubr.msk.f32.mxu1 %vm9853_vm1, %v9852_v46 }
 0x436   :  { %6576 = vrot.lane.b32.xlu1 %v9975_v55, %s9864_s16  ;;  %9024 = vmatprep.subr.mxu1 %v9852_v46 }
 0x437   :  { %4742 = vrot.lane.b32.xlu0 %v9975_v55, %s9863_s15 }
 0x43a   :  { %7493 = vrot.lane.b32.xlu1 %v9973_v54, %s9864_s16 }
 0x43c   :  { %8992 = vmatmul.mubr.f32.vlgmr.msra.gmra.mrb[6].mxu1 %v2063_v42 }
 0x43d   :  { %9026 = vmatprep.mubr.msk.f32.mxu1 %vm9853_vm1, %v9852_v46 }
 0x471   :  { %v2905_v62 = vpop.xlane.xlu1 %2904 }
 0x472   :  { %9735 = vrcp.f32 %v2905_v62 }
 0x475   :  { %v2909_v63 = vpop.permute.xlu1 %2908 }
 0x476   :  { %v2915_v0 = vand.u32 4294901760, %v2909_v63 }
 0x478   :  { %9025 = vmatpush3.msra.mxu1 %v2915_v0  ;;  %v2992_v4 = vsub.f32 %v2909_v63, %v2915_v0 }
 0x479   :  { %v3822_v1 = vpop.xlane.xlu0 %3821  ;;  %9029 = vmatprep.subr.mxu1 %v9852_v46  ;;  %v3826_v22 = vpop.permute.xlu1 %3825 }
 0x47a   :  { %v2993_v10 = vand.u32 4294901760, %v2992_v4  ;;  %v3832_v24 = vand.u32 4294901760, %v3826_v22 }
 0x47c   :  { %v9736_v2 = vpop.eup %9735  ;;  %v2994_v14 = vsub.f32 %v2992_v4, %v2993_v10  ;;  %v3909_v26 = vsub.f32 %v3826_v22, %v3832_v24 }
 0x47d   :  { %v2907_v3 = vmul.f32 %v9736_v2, %v10191_v28  ;;  %v5650_v5 = vpop.xlane.xlu0 %5649 }
 0x47e   :  { %v5651_v55 = vsub.f32 %v10179_v6, %v5650_v5  ;;  %v2995_v17 = vand.u32 4294901760, %v2994_v14  ;;  %v3910_v30 = vand.u32 4294901760, %v3909_v26 }
 0x47f   :  { %v2912_v54 = vsel %vm613_vm2, %v2907_v3, 0 }
 0x480   :  { %v5652_v7 = vmul.f32 1.442695, %v5651_v55  ;;  %v2980_v9 = vand.u32 4294901760, %v2912_v54 }
 0x482   :  { %9737 = vpow2.f32 %v5652_v7  ;;  %v2981_v12 = vsub.f32 %v2912_v54, %v2980_v9 }
 0x483   :  { %9739 = vrcp.f32 %v3822_v1 }
 0x484   :  { %v2982_v13 = vand.u32 4294901760, %v2981_v12 }
 0x486   :  { %v2983_v15 = vsub.f32 %v2981_v12, %v2982_v13 }
 0x488   :  { %v2984_v16 = vand.u32 4294901760, %v2983_v15 }
 0x48a   :  { %9027 = vmatmul.mubr.f32.vlgmr.msra.gmra.mrb[8].mxu1 %v2984_v16 }
 0x48b   :  { %9030 = vmatpush3.msra.mxu1 %v2995_v17  ;;  %9031 = vmatprep.mubr.msk.f32.mxu1 %vm9853_vm1, %v9852_v46 }
 0x48c   :  { %v10261_v18 = vpop.eup %9737  ;;  %9034 = vmatprep.subr.mxu1 %v9852_v46 }
 0x48d   :  { %v5654_v6 = vsel %vm613_vm2, %v10261_v18, 0.0  ;;  %v9740_v19 = vpop.eup %9739 }
 0x48e   :  { %5655 = vadd.xlane.f32.xlu0 %v5654_v6  ;;  %v3824_v20 = vmul.f32 %v9740_v19, %v10197_v35  ;;  %v3911_v35 = vsub.f32 %v3909_v26, %v3910_v30 }
 0x490   :  { %v3829_v21 = vsel %vm613_vm2, %v3824_v20, 0  ;;  %v3912_v37 = vand.u32 4294901760, %v3911_v35 }
 0x491   :  { %v10277_v23 = vand.u32 4294901760, %v3829_v21 }
 0x492   :  { %9032 = vmatmul.mubr.f32.vlgmr.msra.gmra.mrb[8].mxu1 %v2980_v9 }
 0x493   :  { %9035 = vmatpush3.msra.mxu1 %v2992_v4  ;;  %9036 = vmatprep.mubr.msk.f32.mxu1 %vm9853_vm1, %v9852_v46  ;;  %v3898_v25 = vsub.f32 %v3829_v21, %v10277_v23 }
 0x494   :  { %9039 = vmatprep.subr.mxu1 %v9852_v46 }
 0x495   :  { %v3899_v29 = vand.u32 4294901760, %v3898_v25 }
 0x497   :  { %v3900_v34 = vsub.f32 %v3898_v25, %v3899_v29 }
 0x49a   :  { %9037 = vmatmul.mubr.f32.vlgmr.msra.gmra.mrb[8].mxu1 %v2981_v12 }
 0x49b   :  { %9040 = vmatpush3.msra.mxu1 %v2915_v0  ;;  %9041 = vmatprep.mubr.msk.f32.mxu1 %vm9853_vm1, %v9852_v46 }
 0x49c   :  { %9044 = vmatprep.subr.mxu1 %v9852_v46 }
 0x4a2   :  { %9042 = vmatmul.mubr.f32.vlgmr.msra.gmra.mrb[8].mxu1 %v2982_v13 }
 0x4a3   :  { %9045 = vmatpush3.msra.mxu1 %v2993_v10  ;;  %9046 = vmatprep.mubr.msk.f32.mxu1 %vm9853_vm1, %v9852_v46 }
 0x4a4   :  { %9049 = vmatprep.subr.mxu1 %v9852_v46 }
 0x4aa   :  { %v6567_v27 = vpop.xlane.xlu1 %6566  ;;  %9047 = vmatmul.mubr.f32.vlgmr.msra.gmra.mrb[8].mxu1 %v2980_v9 }
 0x4ab   :  { %v6568_v28 = vsub.f32 %v10183_v8, %v6567_v27  ;;  %9050 = vmatpush3.msra.mxu1 %v2915_v0  ;;  %9051 = vmatprep.mubr.msk.f32.mxu1 %vm9853_vm1, %v9852_v46  ;;  %v3901_v8 = vand.u32 4294901760, %v3900_v34 }
 0x4ac   :  { %9084 = vmatprep.subr.mxu1 %v9852_v46 }
 0x4ad   :  { %v6569_v31 = vmul.f32 1.442695, %v6568_v28 }
 0x4ae   :  { %v7484_v32 = vpop.xlane.xlu1 %7483  ;;  %v4739_v38 = vpop.xlane.xlu0 %4738 }
 0x4af   :  { %9741 = vpow2.f32 %v6569_v31  ;;  %v7485_v33 = vsub.f32 %v10187_v11, %v7484_v32 }
 0x4b1   :  { %v7486_v36 = vmul.f32 1.442695, %v7485_v33 }
 0x4b2   :  { %9052 = vmatmul.mubr.f32.vlgmr.msra.gmra.mrb[8].mxu1 %v2980_v9  ;;  %v4743_v45 = vpop.permute.xlu0 %4742  ;;  %v5660_v61 = vpop.permute.xlu1 %5659 }
 0x4b3   :  { %9743 = vpow2.f32 %v7486_v36  ;;  %9085 = vmatpush3.msra.mxu1 %v3832_v24  ;;  %9086 = vmatprep.mubr.msk.f32.mxu1 %vm9853_vm1, %v9852_v46  ;;  %v4749_v48 = vand.u32 4294901760, %v4743_v45  ;;  %v5666_v62 = vand.u32 4294901760, %v5660_v61 }
 0x4b4   :  { %9089 = vmatprep.subr.mxu1 %v9852_v46  ;;  %9745 = vrcp.f32 %v4739_v38 }
 0x4b5   :  { %v4826_v50 = vsub.f32 %v4743_v45, %v4749_v48  ;;  %v5743_v3 = vsub.f32 %v5660_v61, %v5666_v62 }
 0x4b6   :  { %9087 = vmatmul.mubr.f32.vlgmr.msra.gmra.mrb[10].mxu1 %v3901_v8  ;;  %v6577_v16 = vpop.permute.xlu1 %6576 }
 0x4b7   :  { %9090 = vmatpush3.msra.mxu1 %v3912_v37  ;;  %9091 = vmatprep.mubr.msk.f32.mxu1 %vm9853_vm1, %v9852_v46  ;;  %v4827_v53 = vand.u32 4294901760, %v4826_v50  ;;  %v5744_v54 = vand.u32 4294901760, %v5743_v3  ;;  %v6583_v17 = vand.u32 4294901760, %v6577_v16 }
 0x4b8   :  { %9094 = vmatprep.subr.mxu1 %v9852_v46 }
 0x4b9   :  { %v10291_v11 = vpop.eup %9741  ;;  %v4828_v57 = vsub.f32 %v4826_v50, %v4827_v53  ;;  %v5745_v10 = vsub.f32 %v5743_v3, %v5744_v54  ;;  %v6660_v6 = vsub.f32 %v6577_v16, %v6583_v17 }
 0x4ba   :  { %v6571_v39 = vsel %vm613_vm2, %v10291_v11, 0.0  ;;  %v7494_v33 = vpop.permute.xlu1 %7493 }
 0x4bb   :  { %6572 = vadd.xlane.f32.xlu0 %v6571_v39  ;;  %v4829_v52 = vand.u32 4294901760, %v4828_v57  ;;  %v5746_v14 = vand.u32 4294901760, %v5745_v10  ;;  %v6661_v22 = vand.u32 4294901760, %v6660_v6  ;;  %v7500_v35 = vand.u32 4294901760, %v7494_v33  ;;  %v7978_v57 = vld [vmem:[#allocation7 + $0x8] sm:$0xff] }
 0x4bd   :  { %v10295_v40 = vpop.eup %9743  ;;  %v7577_v8 = vsub.f32 %v7494_v33, %v7500_v35 }
 0x4be   :  { %9092 = vmatmul.mubr.f32.vlgmr.msra.gmra.mrb[10].mxu1 %v10277_v23  ;;  %v7488_v41 = vsel %vm613_vm2, %v10295_v40, 0.0  ;;  %v9746_v42 = vpop.eup %9745 }
 0x4bf   :  { %9095 = vmatpush3.msra.mxu1 %v3909_v26  ;;  %7489 = vadd.xlane.f32.xlu0 %v7488_v41  ;;  %v4741_v43 = vmul.f32 %v9746_v42, %v10234_v59 }
 0x4c0   :  { %9096 = vmatprep.mubr.msk.f32.mxu1 %vm9853_vm1, %v9852_v46  ;;  %9099 = vmatprep.subr.mxu1 %v9852_v46 }
 0x4c1   :  { %v4746_v44 = vsel %vm613_vm2, %v4741_v43, 0 }
 0x4c2   :  { %v4814_v47 = vand.u32 4294901760, %v4746_v44 }
 0x4c4   :  { %v4815_v49 = vsub.f32 %v4746_v44, %v4814_v47 }
 0x4c6   :  { %9097 = vmatmul.mubr.f32.vlgmr.msra.gmra.mrb[10].mxu1 %v3898_v25  ;;  %v4816_v51 = vand.u32 4294901760, %v4815_v49  ;;  %v6662_v25 = vsub.f32 %v6660_v6, %v6661_v22 }
 0x4c7   :  { %9100 = vmatpush3.msra.mxu1 %v3832_v24  ;;  %9101 = vmatprep.mubr.msk.f32.mxu1 %vm9853_vm1, %v9852_v46 }
 0x4c8   :  { %9104 = vmatprep.subr.mxu1 %v9852_v46  ;;  %v4817_v56 = vsub.f32 %v4815_v49, %v4816_v51  ;;  %v6663_v28 = vand.u32 4294901760, %v6662_v25 }
 0x4ca   :  { %v4818_v58 = vand.u32 4294901760, %v4817_v56  ;;  %v7977_v56 = vld [vmem:[#allocation7] sm:$0xff] }
 0x4ce   :  { %9102 = vmatmul.mubr.f32.vlgmr.msra.gmra.mrb[10].mxu1 %v3899_v29 }
 0x4cf   :  { %9105 = vmatpush3.msra.mxu1 %v3910_v30  ;;  %9106 = vmatprep.mubr.msk.f32.mxu1 %vm9853_vm1, %v9852_v46 }
 0x4d0   :  { %9109 = vmatprep.subr.mxu1 %v9852_v46 }
 0x4d6   :  { %9107 = vmatmul.mubr.f32.vlgmr.msra.gmra.mrb[10].mxu1 %v10277_v23 }
 0x4d7   :  { %9110 = vmatpush3.msra.mxu1 %v3832_v24  ;;  %9111 = vmatprep.mubr.msk.f32.mxu1 %vm9853_vm1, %v9852_v46 }
 0x4d8   :  { %9144 = vmatprep.subr.mxu1 %v9852_v46 }
 0x4de   :  { %9112 = vmatmul.mubr.f32.vlgmr.msra.gmra.mrb[10].mxu1 %v10277_v23 }
 0x4df   :  { %9145 = vmatpush3.msra.mxu1 %v4749_v48  ;;  %9146 = vmatprep.mubr.msk.f32.mxu1 %vm9853_vm1, %v9852_v46 }
 0x4e0   :  { %9149 = vmatprep.subr.mxu1 %v9852_v46 }
 0x4e2   :  { %9147 = vmatmul.mubr.f32.vlgmr.msra.gmra.mrb[12].mxu1 %v4818_v58  ;;  %v7998_v58 = vand.u32 4294901760, %v7978_v57 }
 0x4e3   :  { %9150 = vmatpush3.msra.mxu1 %v4829_v52  ;;  %v10319_v59 = vpop.f32.mrb[4].mxu1  ;;  %9151 = vmatprep.mubr.msk.f32.mxu1 %vm9853_vm1, %v9852_v46 }
 0x4e4   :  { %v8933_v60 = vpop.f32.mrb[5].mxu1  ;;  %9154 = vmatprep.subr.mxu1 %v9852_v46  ;;  %v8092_v61 = vsub.f32 %v7978_v57, %v7998_v58 }
 0x4ea   :  { %9152 = vmatmul.mubr.f32.vlgmr.msra.gmra.mrb[12].mxu1 %v4814_v47 }
 0x4eb   :  { %9155 = vmatpush3.msra.mxu1 %v4826_v50  ;;  %9156 = vmatprep.mubr.msk.f32.mxu1 %vm9853_vm1, %v9852_v46 }
 0x4ec   :  { %9159 = vmatprep.subr.mxu1 %v9852_v46 }
 0x4f2   :  { %9157 = vmatmul.mubr.f32.vlgmr.msra.gmra.mrb[12].mxu1 %v4815_v49 }
 0x4f3   :  { %9160 = vmatpush3.msra.mxu1 %v4749_v48  ;;  %9161 = vmatprep.mubr.msk.f32.mxu1 %vm9853_vm1, %v9852_v46 }
 0x4f4   :  { %9164 = vmatprep.subr.mxu1 %v9852_v46 }
 0x4fa   :  { %9162 = vmatmul.mubr.f32.vlgmr.msra.gmra.mrb[12].mxu1 %v4816_v51 }
 0x4fb   :  { %9165 = vmatpush3.msra.mxu1 %v4827_v53  ;;  %9166 = vmatprep.mubr.msk.f32.mxu1 %vm9853_vm1, %v9852_v46 }
 0x4fc   :  { %9169 = vmatprep.subr.mxu1 %v9852_v46 }
 0x502   :  { %9167 = vmatmul.mubr.f32.vlgmr.msra.gmra.mrb[12].mxu1 %v4814_v47 }
 0x503   :  { %9170 = vmatpush3.msra.mxu1 %v4749_v48  ;;  %9171 = vmatprep.mubr.msk.f32.mxu1 %vm9853_vm1, %v9852_v46 }
 0x504   :  { %9204 = vmatprep.subr.mxu1 %v9852_v46 }
 0x50a   :  { %9172 = vmatmul.mubr.f32.vlgmr.msra.gmra.mrb[12].mxu1 %v4814_v47 }
 0x50b   :  { %9205 = vmatpush3.msra.mxu1 %v5666_v62  ;;  %9206 = vmatprep.mubr.msk.f32.mxu1 %vm9853_vm1, %v9852_v46 }
 0x50c   :  { %9209 = vmatprep.subr.mxu1 %v9852_v46 }
 0x50f   :  { %v10339_v63 = vpop.f32.mrb[6].mxu1 }
 0x510   :  { %v8993_v0 = vpop.f32.mrb[7].mxu1 }
 0x511   :  { %v7980_v0 = vld [vmem:[#allocation7 + $0x18] sm:$0xff] }
 0x51b   :  { %v5656_v1 = vpop.xlane.xlu0 %5655 }
 0x51c   :  { %9747 = vrcp.f32 %v5656_v1 }
 0x526   :  { %v9748_v2 = vpop.eup %9747 }
 0x527   :  { %v5658_v4 = vmul.f32 %v9748_v2, %v10261_v18  ;;  %v8004_v2 = vand.u32 4294901760, %v7980_v0 }
 0x529   :  { %v5663_v5 = vsel %vm613_vm2, %v5658_v4, 0  ;;  %v8093_v4 = vand.u32 4294901760, %v8092_v61 }
 0x52a   :  { %v5731_v55 = vand.u32 4294901760, %v5663_v5 }
 0x52c   :  { %v5732_v7 = vsub.f32 %v5663_v5, %v5731_v55 }
 0x52e   :  { %v5733_v9 = vand.u32 4294901760, %v5732_v7 }
 0x530   :  { %v5734_v12 = vsub.f32 %v5732_v7, %v5733_v9 }
 0x532   :  { %v5735_v13 = vand.u32 4294901760, %v5734_v12 }
 0x534   :  { %9207 = vmatmul.mubr.f32.vlgmr.msra.gmra.mrb[14].mxu1 %v5735_v13 }
 0x535   :  { %9210 = vmatpush3.msra.mxu1 %v5746_v14  ;;  %9211 = vmatprep.mubr.msk.f32.mxu1 %vm9853_vm1, %v9852_v46 }
 0x536   :  { %9214 = vmatprep.subr.mxu1 %v9852_v46 }
 0x53c   :  { %9212 = vmatmul.mubr.f32.vlgmr.msra.gmra.mrb[14].mxu1 %v5731_v55 }
 0x53d   :  { %9215 = vmatpush3.msra.mxu1 %v5743_v3  ;;  %9216 = vmatprep.mubr.msk.f32.mxu1 %vm9853_vm1, %v9852_v46 }
 0x53e   :  { %9219 = vmatprep.subr.mxu1 %v9852_v46 }
 0x544   :  { %9217 = vmatmul.mubr.f32.vlgmr.msra.gmra.mrb[14].mxu1 %v5732_v7 }
 0x545   :  { %9220 = vmatpush3.msra.mxu1 %v5666_v62  ;;  %9221 = vmatprep.mubr.msk.f32.mxu1 %vm9853_vm1, %v9852_v46 }
 0x546   :  { %9224 = vmatprep.subr.mxu1 %v9852_v46 }
 0x548   :  { %v6573_v15 = vpop.xlane.xlu0 %6572 }
 0x549   :  { %9749 = vrcp.f32 %v6573_v15 }
 0x54c   :  { %9222 = vmatmul.mubr.f32.vlgmr.msra.gmra.mrb[14].mxu1 %v5733_v9  ;;  %v7490_v29 = vpop.xlane.xlu0 %7489  ;;  %v8106_v9 = vsub.f32 %v7980_v0, %v8004_v2 }
 0x54d   :  { %9225 = vmatpush3.msra.mxu1 %v5744_v54  ;;  %9226 = vmatprep.mubr.msk.f32.mxu1 %vm9853_vm1, %v9852_v46  ;;  %9751 = vrcp.f32 %v7490_v29  ;;  %v8094_v54 = vsub.f32 %v8092_v61, %v8093_v4 }
 0x54e   :  { %9229 = vmatprep.subr.mxu1 %v9852_v46  ;;  %v8107_v14 = vand.u32 4294901760, %v8106_v9 }
 0x54f   :  { %v8095_v12 = vand.u32 4294901760, %v8094_v54 }
 0x553   :  { %v9750_v18 = vpop.eup %9749 }
 0x554   :  { %v6575_v19 = vmul.f32 %v9750_v18, %v10291_v11  ;;  %9227 = vmatmul.mubr.f32.vlgmr.msra.gmra.mrb[14].mxu1 %v5731_v55  ;;  %v7578_v11 = vand.u32 4294901760, %v7577_v8  ;;  %v8108_v18 = vsub.f32 %v8106_v9, %v8107_v14 }
 0x555   :  { %9230 = vmatpush3.msra.mxu1 %v5666_v62  ;;  %9231 = vmatprep.mubr.msk.f32.mxu1 %vm9853_vm1, %v9852_v46  ;;  %v7979_v62 = vld [vmem:[#allocation7 + $0x10] sm:$0xff] }
 0x556   :  { %9264 = vmatprep.subr.mxu1 %v9852_v46  ;;  %v6580_v20 = vsel %vm613_vm2, %v6575_v19, 0  ;;  %v7579_v41 = vsub.f32 %v7577_v8, %v7578_v11  ;;  %v8001_v1 = vand.u32 4294901760, %v7979_v62 }
 0x557   :  { %v6648_v21 = vand.u32 4294901760, %v6580_v20  ;;  %v9752_v30 = vpop.eup %9751 }
 0x558   :  { %v7492_v31 = vmul.f32 %v9752_v30, %v10295_v40  ;;  %v7580_v43 = vand.u32 4294901760, %v7579_v41  ;;  %v10404_v5 = vpack.c.bf16 %v8004_v2, %v8001_v1  ;;  %v8099_v7 = vsub.f32 %v7979_v62, %v8001_v1 }
 0x559   :  { %v6649_v23 = vsub.f32 %v6580_v20, %v6648_v21  ;;  %v8109_v20 = vand.u32 4294901760, %v8108_v18 }
 0x55a   :  { %v7497_v32 = vsel %vm613_vm2, %v7492_v31, 0  ;;  %v8100_v13 = vand.u32 4294901760, %v8099_v7 }
 0x55b   :  { %v6650_v24 = vand.u32 4294901760, %v6649_v23  ;;  %v7565_v34 = vand.u32 4294901760, %v7497_v32 }
 0x55c   :  { %9232 = vmatmul.mubr.f32.vlgmr.msra.gmra.mrb[14].mxu1 %v5731_v55  ;;  %v8101_v16 = vsub.f32 %v8099_v7, %v8100_v13  ;;  %v9504_v25 = vpack.c.bf16 %v8107_v14, %v8100_v13 }
 0x55d   :  { %9265 = vmatpush3.msra.mxu1 %v6583_v17  ;;  %9266 = vmatprep.mubr.msk.f32.mxu1 %vm9853_vm1, %v9852_v46  ;;  %v6651_v26 = vsub.f32 %v6649_v23, %v6650_v24  ;;  %v7566_v36 = vsub.f32 %v7497_v32, %v7565_v34 }
 0x55e   :  { %9269 = vmatprep.subr.mxu1 %v9852_v46  ;;  %v8102_v19 = vand.u32 4294901760, %v8101_v16 }
 0x55f   :  { %v6652_v27 = vand.u32 4294901760, %v6651_v26  ;;  %v7567_v37 = vand.u32 4294901760, %v7566_v36 }
 0x561   :  { %9267 = vmatmul.mubr.f32.vlgmr.msra.gmra.mrb[16].mxu1 %v6652_v27  ;;  %v7568_v40 = vsub.f32 %v7566_v36, %v7567_v37 }
 0x562   :  { %9270 = vmatpush3.msra.mxu1 %v6663_v28  ;;  %9271 = vmatprep.mubr.msk.f32.mxu1 %vm9853_vm1, %v9852_v46 }
 0x563   :  { %9274 = vmatprep.subr.mxu1 %v9852_v46  ;;  %v7569_v42 = vand.u32 4294901760, %v7568_v40 }
 0x569   :  { %9272 = vmatmul.mubr.f32.vlgmr.msra.gmra.mrb[16].mxu1 %v6648_v21 }
 0x56a   :  { %9275 = vmatpush3.msra.mxu1 %v6660_v6  ;;  %9276 = vmatprep.mubr.msk.f32.mxu1 %vm9853_vm1, %v9852_v46 }
 0x56b   :  { %9279 = vmatprep.subr.mxu1 %v9852_v46 }
 0x571   :  { %9277 = vmatmul.mubr.f32.vlgmr.msra.gmra.mrb[16].mxu1 %v6649_v23  ;;  %v9488_v23 = vpack.c.bf16 %v8106_v9, %v8099_v7 }
 0x572   :  { %9280 = vmatpush3.msra.mxu1 %v6583_v17  ;;  %9281 = vmatprep.mubr.msk.f32.mxu1 %vm9853_vm1, %v9852_v46 }
 0x573   :  { %9284 = vmatprep.subr.mxu1 %v9852_v46 }
 0x579   :  { %9282 = vmatmul.mubr.f32.vlgmr.msra.gmra.mrb[16].mxu1 %v6650_v24 }
 0x57a   :  { %9285 = vmatpush3.msra.mxu1 %v6661_v22  ;;  %9286 = vmatprep.mubr.msk.f32.mxu1 %vm9853_vm1, %v9852_v46 }
 0x57b   :  { %9289 = vmatprep.subr.mxu1 %v9852_v46 }
 0x581   :  { %9287 = vmatmul.mubr.f32.vlgmr.msra.gmra.mrb[16].mxu1 %v6648_v21 }
 0x582   :  { %9290 = vmatpush3.msra.mxu1 %v6583_v17  ;;  %9291 = vmatprep.mubr.msk.f32.mxu1 %vm9853_vm1, %v9852_v46 }
 0x583   :  { %9324 = vmatprep.subr.mxu1 %v9852_v46 }
 0x585   :  { %v3356_v38 = vpop.f32.mrb[8].mxu1 }
 0x586   :  { %7947 = vrot.lane.b32.xlu0 %v3356_v38, %s9850_s6  ;;  %v9053_v39 = vpop.f32.mrb[9].mxu1 }
 0x589   :  { %9292 = vmatmul.mubr.f32.vlgmr.msra.gmra.mrb[16].mxu1 %v6648_v21  ;;  %v9480_v21 = vpack.c.bf16 %v8109_v20, %v8102_v19 }
 0x58a   :  { %9325 = vmatpush3.msra.mxu1 %v7500_v35  ;;  %9326 = vmatprep.mubr.msk.f32.mxu1 %vm9853_vm1, %v9852_v46 }
 0x58b   :  { %9329 = vmatprep.subr.mxu1 %v9852_v46 }
 0x58d   :  { %9327 = vmatmul.mubr.f32.vlgmr.msra.gmra.mrb[18].mxu1 %v7569_v42 }
 0x58e   :  { %9330 = vmatpush3.msra.mxu1 %v7580_v43  ;;  %9331 = vmatprep.mubr.msk.f32.mxu1 %vm9853_vm1, %v9852_v46 }
 0x58f   :  { %9334 = vmatprep.subr.mxu1 %v9852_v46 }
 0x595   :  { %9332 = vmatmul.mubr.f32.vlgmr.msra.gmra.mrb[18].mxu1 %v7565_v34 }
 0x596   :  { %9335 = vmatpush3.msra.mxu1 %v7577_v8  ;;  %9336 = vmatprep.mubr.msk.f32.mxu1 %vm9853_vm1, %v9852_v46 }
 0x597   :  { %9339 = vmatprep.subr.mxu1 %v9852_v46 }
 0x59d   :  { %9337 = vmatmul.mubr.f32.vlgmr.msra.gmra.mrb[18].mxu1 %v7566_v36 }
 0x59e   :  { %9340 = vmatpush3.msra.mxu1 %v7500_v35  ;;  %9341 = vmatprep.mubr.msk.f32.mxu1 %vm9853_vm1, %v9852_v46 }
 0x59f   :  { %9344 = vmatprep.subr.mxu1 %v9852_v46 }
 0x5a5   :  { %9342 = vmatmul.mubr.f32.vlgmr.msra.gmra.mrb[18].mxu1 %v7567_v37 }
 0x5a6   :  { %9345 = vmatpush3.msra.mxu1 %v7578_v11  ;;  %9346 = vmatprep.mubr.msk.f32.mxu1 %vm9853_vm1, %v9852_v46 }
 0x5a7   :  { %9349 = vmatprep.subr.mxu1 %v9852_v46 }
 0x5ad   :  { %9347 = vmatmul.mubr.f32.vlgmr.msra.gmra.mrb[18].mxu1 %v7565_v34 }
 0x5ae   :  { %9350 = vmatpush3.msra.mxu1 %v7500_v35  ;;  %9351 = vmatprep.mubr.msk.f32.mxu1 %vm9853_vm1, %v9852_v46  ;;  %v7995_v46 = vand.u32 4294901760, %v7977_v56 }
 0x5b0   :  { %v10400_v52 = vpack.c.bf16 %v7998_v58, %v7995_v46  ;;  %v8085_v60 = vsub.f32 %v7977_v56, %v7995_v46 }
 0x5b1   :  { %v4273_v44 = vpop.f32.mrb[10].mxu1 }
 0x5b2   :  { %7949 = vrot.lane.b32.xlu1 %v4273_v44, %s9850_s6  ;;  %v9113_v45 = vpop.f32.mrb[11].mxu1  ;;  %9469 = vmatprep.subr.bf16.mxu0 %v10400_v52  ;;  %v8086_v3 = vand.u32 4294901760, %v8085_v60  ;;  %v9484_v22 = vpack.c.bf16 %v8092_v61, %v8085_v60 }
 0x5b3   :  { %9471 = vmatpush3.bf16.msra.mxu0 %v10400_v52 }
 0x5b4   :  { %v8087_v55 = vsub.f32 %v8085_v60, %v8086_v3  ;;  %9473 = vmatprep.subr.bf16.mxu0 %v10404_v5  ;;  %v9500_v24 = vpack.c.bf16 %v8093_v4, %v8086_v3 }
 0x5b5   :  { %9352 = vmatmul.mubr.f32.vlgmr.msra.gmra.mrb[18].mxu1 %v7565_v34 }
 0x5b6   :  { %v8088_v10 = vand.u32 4294901760, %v8087_v55 }
 0x5b7   :  { %9475 = vmatpush3.bf16.msra.mxu0 %v10404_v5 }
 0x5b8   :  { %v9476_v15 = vpack.c.bf16 %v8095_v12, %v8088_v10 }
 0x5ba   :  { %9477 = vmatprep.subr.bf16.mxu0 %v9476_v15 }
 0x5dd   :  { %v5190_v47 = vpop.f32.mrb[12].mxu1 }
 0x5de   :  { %7955 = vrot.lane.b32.xlu1 %v5190_v47, %s9865_s1  ;;  %v9173_v48 = vpop.f32.mrb[13].mxu1 }
 0x5f8   :  { %v7948_v28 = vpop.permute.xlu0 %7947 }
 0x5f9   :  { %v7969_v30 = vsel %vm613_vm2, %v10319_v59, %v7948_v28 }
 0x624   :  { %v7950_v26 = vpop.permute.xlu1 %7949 }
 0x625   :  { %v7970_v38 = vsel %vm613_vm2, %v10339_v63, %v7950_v26  ;;  %v8543_v63 = vld [vmem:[%s10447_s4] ss:$0 sm:$0xff] }
 0x62f   :  { %v6107_v49 = vpop.f32.mrb[14].mxu1 }
 0x630   :  { %7957 = vrot.lane.b32.xlu1 %v6107_v49, %s9865_s1  ;;  %v9233_v50 = vpop.f32.mrb[15].mxu1 }
 0x650   :  { %v7956_v27 = vpop.permute.xlu1 %7955 }
 0x651   :  { %v7972_v31 = vsel %vm7971_vm3, %v7969_v30, %v7956_v27 }
 0x65c   :  { %v7024_v51 = vpop.f32.mrb[16].mxu1 }
 0x65d   :  { %7963 = vrot.lane.b32.xlu1 %v7024_v51, %s9866_s17  ;;  %v9293_v53 = vpop.f32.mrb[17].mxu1 }
 0x688   :  { %v7941_v17 = vpop.f32.mrb[18].mxu1 }
 0x689   :  { %7965 = vrot.lane.b32.xlu1 %v7941_v17, %s9866_s17  ;;  %v9353_v6 = vpop.f32.mrb[19].mxu1 }
 0x6a2   :  { %v7958_v29 = vpop.permute.xlu1 %7957 }
 0x6a3   :  { %v7973_v39 = vsel %vm7971_vm3, %v7970_v38, %v7958_v29 }
 0x6cf   :  { %v7964_v32 = vpop.permute.xlu1 %7963 }
 0x6d0   :  { %v7975_v33 = vsel %vm7974_vm4, %v7972_v31, %v7964_v32 }
 0x6d1   :  { %v7989_v34 = vsel %vm75_vm0, %v7975_v33, 0 }
 0x6d2   :  { %v8063_v35 = vand.u32 4294901760, %v7989_v34 }
 0x6d4   :  { %v8064_v36 = vsub.f32 %v7989_v34, %v8063_v35 }
 0x6d6   :  { %v8065_v8 = vand.u32 4294901760, %v8064_v36 }
 0x6d8   :  { %v8066_v37 = vsub.f32 %v8064_v36, %v8065_v8 }
 0x6da   :  { %v8067_v11 = vand.u32 4294901760, %v8066_v37 }
 0x6dc   :  { %9362 = vmatprep.mubr.f32.mxu0 %v8067_v11 }
 0x6fb   :  { %v7966_v40 = vpop.permute.xlu1 %7965 }
 0x6fc   :  { %v7976_v41 = vsel %vm7974_vm4, %v7973_v39, %v7966_v40 }
 0x6fd   :  { %v7992_v42 = vsel %vm75_vm0, %v7976_v41, 0 }
 0x6fe   :  { %v8073_v59 = vand.u32 4294901760, %v7992_v42 }
 0x700   :  { %v8074_v43 = vsub.f32 %v7992_v42, %v8073_v59 }
 0x702   :  { %v8075_v44 = vand.u32 4294901760, %v8074_v43 }
 0x704   :  { %v8076_v45 = vsub.f32 %v8074_v43, %v8075_v44 }
 0x706   :  { %v8077_v47 = vand.u32 4294901760, %v8076_v45 }
 0x708   :  { %9363 = vmatmul.mubr.f32.vlgmr.msra.gmra.mrb[16].mxu0 %v8077_v47 }
 0x709   :  { %9479 = vmatpush3.bf16.msra.mxu0 %v9476_v15  ;;  %9373 = vmatprep.mubr.f32.mxu0 %v8063_v35 }
 0x70a   :  { %9481 = vmatprep.subr.bf16.mxu0 %v9480_v21 }
 0x70d   :  { %9483 = vmatpush3.bf16.msra.mxu0 %v9480_v21 }
 0x70e   :  { %9485 = vmatprep.subr.bf16.mxu0 %v9484_v22 }
 0x710   :  { %9374 = vmatmul.mubr.f32.vlgmr.msra.gmra.mrb[16].mxu0 %v8073_v59 }
 0x711   :  { %9487 = vmatpush3.bf16.msra.mxu0 %v9484_v22  ;;  %9384 = vmatprep.mubr.f32.mxu0 %v8064_v36 }
 0x712   :  { %9489 = vmatprep.subr.bf16.mxu0 %v9488_v23 }
 0x715   :  { %9491 = vmatpush3.bf16.msra.mxu0 %v9488_v23 }
 0x716   :  { %9493 = vmatprep.subr.bf16.mxu0 %v10400_v52 }
 0x718   :  { %9385 = vmatmul.mubr.f32.vlgmr.msra.gmra.mrb[16].mxu0 %v8074_v43 }
 0x719   :  { %9495 = vmatpush3.bf16.msra.mxu0 %v10400_v52  ;;  %9395 = vmatprep.mubr.f32.mxu0 %v8065_v8 }
 0x71a   :  { %9497 = vmatprep.subr.bf16.mxu0 %v10404_v5 }
 0x71d   :  { %9499 = vmatpush3.bf16.msra.mxu0 %v10404_v5 }
 0x71e   :  { %9501 = vmatprep.subr.bf16.mxu0 %v9500_v24 }
 0x720   :  { %9396 = vmatmul.mubr.f32.vlgmr.msra.gmra.mrb[16].mxu0 %v8075_v44 }
 0x721   :  { %9503 = vmatpush3.bf16.msra.mxu0 %v9500_v24  ;;  %9406 = vmatprep.mubr.f32.mxu0 %v8063_v35 }
 0x722   :  { %9505 = vmatprep.subr.bf16.mxu0 %v9504_v25 }
 0x725   :  { %9507 = vmatpush3.bf16.msra.mxu0 %v9504_v25 }
 0x726   :  { %9509 = vmatprep.subr.bf16.mxu0 %v10400_v52 }
 0x728   :  { %9407 = vmatmul.mubr.f32.vlgmr.msra.gmra.mrb[16].mxu0 %v8073_v59 }
 0x729   :  { %9511 = vmatpush3.bf16.msra.mxu0 %v10400_v52  ;;  %9417 = vmatprep.mubr.f32.mxu0 %v8063_v35 }
 0x72a   :  { %9513 = vmatprep.subr.bf16.mxu0 %v10404_v5 }
 0x72d   :  { %9515 = vmatpush3.bf16.msra.mxu0 %v10404_v5 }
 0x730   :  { %9418 = vmatmul.mubr.f32.vlgmr.msra.gmra.mrb[16].mxu0 %v8073_v59 }
 0x803   :  { %v9419_v48 = vpop.f32.mrb[16].mxu0 }
 0x804   :  { %v9520_v49 = vadd.f32 %v9419_v48, %v8543_v63  ;;  %v8512_v50 = vpop.f32.mrb[17].mxu0 }
 0x805   :  { %v9521_v51 = vadd.f32 %v8543_v63, %v8512_v50 }
 0x806   :  { %8523 = vst.msk [vmem:[#allocation8 + $0x8] sm:$0xff] %vm75_vm0, %v9520_v49 }
 0x807   :  { %8522 = vst.msk [vmem:[#allocation8] sm:$0xff] %vm75_vm0, %v9521_v51 }
 0x808   :  { %9830 = shalt.err (!%p9827_p0)
}
 0x809   :  { %s9831_s25 = scalar_lea.hbm %s10448_s5, 256 }
 0x80a   :  { %p9832_p1 = scmp.ne.s32.totalorder %s10448_s5, %s9831_s25  ;;  %p9835_p2 = scmp.lt.u32.totalorder %s9831_s25, %s10448_s5 }
 0x80c   :  { %p9837_p3 = pnand %p9835_p2, %p9832_p1 }
 0x80e   :  { %9840 = shalt.err (!%p9837_p3)
}
 0x80f   :  { %8535 = dma.vmem_to_hbm [thread:$0]  %s8530_s22, 256, %s10448_s5, [#allocation4], %s9849_s30, %s9849_s30, %s9850_s6  }
 0x810   :  { %9845 = dma.done.wait [#allocation4], 256  }
 0x811   :  { %9846 = vsyncadd [#allocation4], 4294967040 }
 0x812   :  { %8539 = vsyncpa [#allocation3], 1 }
 0x813   :  { %8540 = vsyncpa [#allocation6], 1 }
 0x814   :  { %8541 = vsyncpa [#allocation4], 1 }

</bundles_post_ra>
